<compile_context>
chip_gen: v6e
topology: v6e:2x2x1
jax: 0.10.0
libtpu: 0.0.40
codegen_flags: <defaults>
</compile_context>

<pallas_src>
import jax
import jax.numpy as jnp
from jax.experimental import pallas as pl
from jax.experimental.pallas import tpu as pltpu


def _round_up(x, m):
    return (x + m - 1) // m * m


def _batch_tiling(batch, max_tile=512):
    """Pick (batch_tile, padded_batch).

    Small B -> one right-sized tile (round_up(B, 16): no wasted DMA / MXU rows
    beyond sublane alignment). Large B -> tiles up to `max_tile` rows to
    amortize per-grid-step overhead, with >= 2 tiles so v7x megacore can shard
    the batch across both TensorCores.
    """
    if batch <= 128:
        tile = _round_up(batch, 16)
        return tile, tile
    tile = min(max_tile, _round_up((batch + 1) // 2, 16))
    return tile, _round_up(batch, tile)


def mlp_kernel(x_ref, w1_ref, b1_ref, w2_ref, b2_ref, w3_ref, b3_ref, o_ref):
    # x arrives f32 at its natural 784-wide feature dim; cast to bf16 for the
    # MXU here (Mosaic lane-pads 784->896 in the VMEM layout for free).
    x = x_ref[...].astype(jnp.bfloat16)

    # Layer 1: bf16 MXU matmul, f32 accumulation; f32 bias + ReLU epilogue.
    h = jnp.dot(x, w1_ref[...], preferred_element_type=jnp.float32)
    h = jnp.maximum(h + b1_ref[...], 0.0)

    # Layer 2 (nn.Dropout(0.2) is identity at inference).
    h = jnp.dot(h.astype(jnp.bfloat16), w2_ref[...],
                preferred_element_type=jnp.float32)
    h = jnp.maximum(h + b2_ref[...], 0.0)

    # Output layer (columns lane-padded to 128; wrapper slices back to 10).
    out = jnp.dot(h.astype(jnp.bfloat16), w3_ref[...],
                  preferred_element_type=jnp.float32)
    o_ref[...] = (out + b3_ref[...]).astype(o_ref.dtype)


def prepare_params(params):
    """One-time kernel weight prep — call at init/load time, NOT per forward.

    Weights -> bf16 (halves weight HBM traffic, native MXU path); output
    projection lane-padded 10 -> 128 so the final store is a dense vst.
    Biases stay f32 for the f32 epilogue.
    """
    out_dim = params["w3"].shape[1]
    pad_cols = _round_up(out_dim, 128) - out_dim
    return {
        "w1": params["w1"].astype(jnp.bfloat16),
        "b1": params["b1"].astype(jnp.float32),
        "w2": params["w2"].astype(jnp.bfloat16),
        "b2": params["b2"].astype(jnp.float32),
        "w3": jnp.pad(params["w3"], ((0, 0), (0, pad_cols))).astype(jnp.bfloat16),
        "b3": jnp.pad(params["b3"], ((0, 0), (0, pad_cols))).astype(jnp.float32),
    }


def network_forward(x, kparams, *, out_dim, max_batch_tile=512,
                    out_dtype=jnp.float32):
    """x: (B, 784) float32; kparams: output of prepare_params (bf16 weights)."""
    B, in_dim = x.shape
    w1, b1 = kparams["w1"], kparams["b1"]
    w2, b2 = kparams["w2"], kparams["b2"]
    w3, b3 = kparams["w3"], kparams["b3"]
    assert in_dim == w1.shape[0], (in_dim, w1.shape)
    h1, h2, out_pad = w1.shape[1], w2.shape[1], w3.shape[1]

    batch_tile, b_pad = _batch_tiling(B, max_batch_tile)
    xp = x if b_pad == B else jnp.pad(x, ((0, b_pad - B), (0, 0)))
    n_tiles = b_pad // batch_tile

    # Weights/biases: constant block index across the grid -> fetched once,
    # resident in VMEM for all batch tiles.
    resident = lambda arr: pl.BlockSpec(arr.shape, lambda i: (0, 0))

    flops = 2 * b_pad * (in_dim * h1 + h1 * h2 + h2 * out_pad)
    bytes_accessed = (xp.size * 4                                   # f32 input read
                      + (w1.size + w2.size + w3.size) * 2           # bf16 weights
                      + (b1.size + b2.size + b3.size) * 4           # f32 biases
                      + b_pad * out_pad * jnp.dtype(out_dtype).itemsize)

    out_padded = pl.pallas_call(
        mlp_kernel,
        out_shape=jax.ShapeDtypeStruct((b_pad, out_pad), out_dtype),
        grid=(n_tiles,),
        in_specs=[
            pl.BlockSpec((batch_tile, in_dim), lambda i: (i, 0)),   # x: per-tile
            resident(w1), resident(b1),                             # weights resident
            resident(w2), resident(b2),
            resident(w3), resident(b3),
        ],
        out_specs=pl.BlockSpec((batch_tile, out_pad), lambda i: (i, 0)),
        compiler_params=pltpu.CompilerParams(
            dimension_semantics=("parallel",)),
        cost_estimate=pl.CostEstimate(
            flops=flops, transcendentals=0, bytes_accessed=bytes_accessed),
    )(xp, w1, b1, w2, b2, w3, b3)

    return out_padded[:B, :out_dim]


def init_params(key, input_size=28 * 28, hidden=(512, 512), output_size=10):
    """Deterministic synthetic parameters (PyTorch Linear init, stored (in,out))."""
    dims = (input_size,) + tuple(hidden) + (output_size,)
    params = {}
    keys = jax.random.split(key, 2 * (len(dims) - 1))
    for i, (d_in, d_out) in enumerate(zip(dims[:-1], dims[1:])):
        bound = 1.0 / jnp.sqrt(d_in)
        w = jax.random.uniform(keys[2 * i], (d_in, d_out), jnp.float32, -bound, bound)
        b = jax.random.uniform(keys[2 * i + 1], (1, d_out), jnp.float32, -bound, bound)
        params[f"w{i + 1}"] = w
        params[f"b{i + 1}"] = b
    return params


def reference_forward(x, params):
    """Pure-JAX reference matching the kernel's bf16-weight / f32-accum numerics."""
    q = lambda a: a.astype(jnp.bfloat16).astype(jnp.float32)
    h = jnp.maximum(q(x) @ q(params["w1"]) + params["b1"], 0.0)
    h = jnp.maximum(q(h) @ q(params["w2"]) + params["b2"], 0.0)
    return q(h) @ q(params["w3"]) + params["b3"]


if __name__ == "__main__":
    key = jax.random.PRNGKey(0)
    k_x, k_p = jax.random.split(key)

    INPUT = 28 * 28  # 784, per the module
    params = init_params(k_p, input_size=INPUT, hidden=(512, 512), output_size=10)
    kp = prepare_params(params)          # one-time weight pad/cast (hoisted)

    fwd = jax.jit(network_forward,
                  static_argnames=("out_dim", "max_batch_tile", "out_dtype"))

    # Small batch: single right-sized 16-row tile.
    B = 8
    x = jax.random.normal(k_x, (B, INPUT), dtype=jnp.float32)
    out = jax.block_until_ready(fwd(x, kp, out_dim=10))
    ref = reference_forward(x, params)
    assert out.shape == (B, 10), out.shape
    assert jnp.allclose(out, ref, atol=1e-2, rtol=1e-2), "mismatch vs ref (B=8)"

    # Multi-tile path: 2 batch tiles -> exercises megacore sharding on v7x.
    B2 = 144
    x2 = jax.random.normal(k_x, (B2, INPUT), dtype=jnp.float32)
    out2 = jax.block_until_ready(fwd(x2, kp, out_dim=10))
    ref2 = reference_forward(x2, params)
    assert out2.shape == (B2, 10), out2.shape
    assert jnp.allclose(out2, ref2, atol=1e-2, rtol=1e-2), "mismatch vs ref (B=144)"

    print("KERNEL_OK")
</pallas_src>

<mosaic_0001>
module attributes {stable_mosaic.version = 11 : i64} {
  func.func @mlp_kernel(%arg0: i32, %arg1: memref<16x784xf32, #tpu.memory_space<vmem>>, %arg2: memref<784x512xbf16, #tpu.memory_space<vmem>>, %arg3: memref<1x512xf32, #tpu.memory_space<vmem>>, %arg4: memref<512x512xbf16, #tpu.memory_space<vmem>>, %arg5: memref<1x512xf32, #tpu.memory_space<vmem>>, %arg6: memref<512x128xbf16, #tpu.memory_space<vmem>>, %arg7: memref<1x128xf32, #tpu.memory_space<vmem>>, %arg8: memref<16x128xf32, #tpu.memory_space<vmem>>) attributes {dimension_semantics = [#tpu.dimension_semantics<parallel>], iteration_bounds = array<i64: 1>, scalar_prefetch = 0 : i64, scratch_operands = 0 : i64, tpu.core_type = #tpu.core_type<tc>, window_params = [{transform_indices = @transform_0, window_bounds = array<i64: 16, 784>}, {pipeline_mode = #tpu.pipeline_mode<synchronous>, transform_indices = @transform_1, window_bounds = array<i64: 784, 512>}, {pipeline_mode = #tpu.pipeline_mode<synchronous>, transform_indices = @transform_2, window_bounds = array<i64: 1, 512>}, {pipeline_mode = #tpu.pipeline_mode<synchronous>, transform_indices = @transform_3, window_bounds = array<i64: 512, 512>}, {pipeline_mode = #tpu.pipeline_mode<synchronous>, transform_indices = @transform_4, window_bounds = array<i64: 1, 512>}, {pipeline_mode = #tpu.pipeline_mode<synchronous>, transform_indices = @transform_5, window_bounds = array<i64: 512, 128>}, {pipeline_mode = #tpu.pipeline_mode<synchronous>, transform_indices = @transform_6, window_bounds = array<i64: 1, 128>}, {transform_indices = @transform_7, window_bounds = array<i64: 16, 128>}]} {
    %c0 = arith.constant 0 : index
    %c0_0 = arith.constant 0 : index
    %0 = vector.load %arg1[%c0, %c0_0] : memref<16x784xf32, #tpu.memory_space<vmem>>, vector<16x784xf32>
    %1 = arith.truncf %0 : vector<16x784xf32> to vector<16x784xbf16>
    %c0_1 = arith.constant 0 : index
    %c0_2 = arith.constant 0 : index
    %2 = vector.load %arg2[%c0_1, %c0_2] : memref<784x512xbf16, #tpu.memory_space<vmem>>, vector<784x512xbf16>
    %cst = arith.constant dense<0.000000e+00> : vector<16x512xf32>
    %3 = tpu.matmul %1, %2, %cst {dimension_numbers = #tpu.dot_dimension_numbers<[1], [0], [0], [1], [0, 0, 1, 1], [], []>} : vector<16x784xbf16>, vector<784x512xbf16>, vector<16x512xf32> -> vector<16x512xf32>
    %c0_3 = arith.constant 0 : index
    %c0_4 = arith.constant 0 : index
    %4 = vector.load %arg3[%c0_3, %c0_4] : memref<1x512xf32, #tpu.memory_space<vmem>>, vector<1x512xf32>
    %5 = vector.broadcast %4 : vector<1x512xf32> to vector<16x512xf32>
    %6 = arith.addf %3, %5 : vector<16x512xf32>
    %cst_5 = arith.constant 0.000000e+00 : f32
    %7 = vector.broadcast %cst_5 : f32 to vector<16x512xf32>
    %8 = arith.maximumf %6, %7 : vector<16x512xf32>
    %9 = arith.truncf %8 : vector<16x512xf32> to vector<16x512xbf16>
    %c0_6 = arith.constant 0 : index
    %c0_7 = arith.constant 0 : index
    %10 = vector.load %arg4[%c0_6, %c0_7] : memref<512x512xbf16, #tpu.memory_space<vmem>>, vector<512x512xbf16>
    %cst_8 = arith.constant dense<0.000000e+00> : vector<16x512xf32>
    %11 = tpu.matmul %9, %10, %cst_8 {dimension_numbers = #tpu.dot_dimension_numbers<[1], [0], [0], [1], [0, 0, 1, 1], [], []>} : vector<16x512xbf16>, vector<512x512xbf16>, vector<16x512xf32> -> vector<16x512xf32>
    %c0_9 = arith.constant 0 : index
    %c0_10 = arith.constant 0 : index
    %12 = vector.load %arg5[%c0_9, %c0_10] : memref<1x512xf32, #tpu.memory_space<vmem>>, vector<1x512xf32>
    %13 = vector.broadcast %12 : vector<1x512xf32> to vector<16x512xf32>
    %14 = arith.addf %11, %13 : vector<16x512xf32>
    %cst_11 = arith.constant 0.000000e+00 : f32
    %15 = vector.broadcast %cst_11 : f32 to vector<16x512xf32>
    %16 = arith.maximumf %14, %15 : vector<16x512xf32>
    %17 = arith.truncf %16 : vector<16x512xf32> to vector<16x512xbf16>
    %c0_12 = arith.constant 0 : index
    %c0_13 = arith.constant 0 : index
    %18 = vector.load %arg6[%c0_12, %c0_13] : memref<512x128xbf16, #tpu.memory_space<vmem>>, vector<512x128xbf16>
    %cst_14 = arith.constant dense<0.000000e+00> : vector<16x128xf32>
    %19 = tpu.matmul %17, %18, %cst_14 {dimension_numbers = #tpu.dot_dimension_numbers<[1], [0], [0], [1], [0, 0, 1, 1], [], []>} : vector<16x512xbf16>, vector<512x128xbf16>, vector<16x128xf32> -> vector<16x128xf32>
    %c0_15 = arith.constant 0 : index
    %c0_16 = arith.constant 0 : index
    %20 = vector.load %arg7[%c0_15, %c0_16] : memref<1x128xf32, #tpu.memory_space<vmem>>, vector<1x128xf32>
    %21 = vector.broadcast %20 : vector<1x128xf32> to vector<16x128xf32>
    %22 = arith.addf %19, %21 : vector<16x128xf32>
    %c0_17 = arith.constant 0 : index
    %c0_18 = arith.constant 0 : index
    %23 = vector.load %arg8[%c0_17, %c0_18] : memref<16x128xf32, #tpu.memory_space<vmem>>, vector<16x128xf32>
    tpu.vector_store %arg8[%c0_17, %c0_18], %22 {strides = array<i32>} : memref<16x128xf32, #tpu.memory_space<vmem>>, vector<16x128xf32>,
    return
  }
  func.func @transform_0(%arg0: i32) -> (i32, i32) {
    %c0_i32 = arith.constant 0 : i32
    %c0_i32_0 = arith.constant 0 : i32
    return %arg0, %c0_i32 : i32, i32
  }
  func.func @transform_1(%arg0: i32) -> (i32, i32) {
    %c0_i32 = arith.constant 0 : i32
    %c0_i32_0 = arith.constant 0 : i32
    %c0_i32_1 = arith.constant 0 : i32
    return %c0_i32, %c0_i32_0 : i32, i32
  }
  func.func @transform_2(%arg0: i32) -> (i32, i32) {
    %c0_i32 = arith.constant 0 : i32
    %c0_i32_0 = arith.constant 0 : i32
    %c0_i32_1 = arith.constant 0 : i32
    return %c0_i32, %c0_i32_0 : i32, i32
  }
  func.func @transform_3(%arg0: i32) -> (i32, i32) {
    %c0_i32 = arith.constant 0 : i32
    %c0_i32_0 = arith.constant 0 : i32
    %c0_i32_1 = arith.constant 0 : i32
    return %c0_i32, %c0_i32_0 : i32, i32
  }
  func.func @transform_4(%arg0: i32) -> (i32, i32) {
    %c0_i32 = arith.constant 0 : i32
    %c0_i32_0 = arith.constant 0 : i32
    %c0_i32_1 = arith.constant 0 : i32
    return %c0_i32, %c0_i32_0 : i32, i32
  }
  func.func @transform_5(%arg0: i32) -> (i32, i32) {
    %c0_i32 = arith.constant 0 : i32
    %c0_i32_0 = arith.constant 0 : i32
    %c0_i32_1 = arith.constant 0 : i32
    return %c0_i32, %c0_i32_0 : i32, i32
  }
  func.func @transform_6(%arg0: i32) -> (i32, i32) {
    %c0_i32 = arith.constant 0 : i32
    %c0_i32_0 = arith.constant 0 : i32
    %c0_i32_1 = arith.constant 0 : i32
    return %c0_i32, %c0_i32_0 : i32, i32
  }
  func.func @transform_7(%arg0: i32) -> (i32, i32) {
    %c0_i32 = arith.constant 0 : i32
    %c0_i32_0 = arith.constant 0 : i32
    return %arg0, %c0_i32 : i32, i32
  }
}

</mosaic_0001>

<bundles_post_ra>
// kernel: network_forward.1
= control target key start
LH: loop header
LB: loop body
LE: loop exit
PB: predicated region body
PF: predicated region fallthrough
CT: control target
= control target key end

     0   :  { %12 = vsyncpa [#allocation3], 0  ;;  %s4149_s0 = inlined_call_operand.vmem [shape: f32[16,784], index: 0, kind: input, shape index: {}]   ;;  %s4150_s1 = inlined_call_operand.hbm [shape: bf16[784,512], index: 1, kind: input, shape index: {}]   ;;  %s4151_s2 = inlined_call_operand.vmem [shape: f32[1,512], index: 2, kind: input, shape index: {}]   ;;  %s4152_s3 = inlined_call_operand.hbm [shape: bf16[512,512], index: 3, kind: input, shape index: {}]   ;;  %s4153_s4 = inlined_call_operand.vmem [shape: f32[1,512], index: 4, kind: input, shape index: {}]   ;;  %s4154_s5 = inlined_call_operand.hbm [shape: bf16[512,128], index: 5, kind: input, shape index: {}]   ;;  %s4155_s6 = inlined_call_operand.vmem [shape: f32[1,128], index: 6, kind: input, shape index: {}]   ;;  %s4156_s7 = inlined_call_operand.vmem [shape: f32[16,128], index: 7, kind: output, shape index: {}]  }
   0x1   :  { %13 = vsyncpa [#allocation5], 0  ;;  %s3967_s24 = smov [#allocation4]   ;;  %s3968_s26 = smov [#allocation2]  }
   0x2   :  { %s35_s25 = sshll.u32 %s3967_s24, 4  ;;  %s21_s27 = sshll.u32 %s3968_s26, 4  ;;  %s36_s25 = int_to_ptr.vmem [resolvable:$true] %s35_s25  ;;  %s22_s27 = int_to_ptr.vmem [resolvable:$true] %s21_s27 }
   0x3   :  { %s3911_s28 = scalar_lea.vmem %s36_s25, 16384  ;;  %p3916_p1 = scmp.lt.s32.totalorder %s36_s25, %s36_s25 }
   0x4   :  { %p3912_p0 = scmp.ne.s32.totalorder %s36_s25, %s3911_s28  ;;  %p3917_p2 = scmp.lt.s32.totalorder %s3911_s28, %s3911_s28 }
   0x6   :  { %p3918_p3 = por %p3917_p2, %p3916_p1 }
   0x8   :  { %p3919_p4 = pnand %p3918_p3, %p3912_p0 }
   0xa   :  { %3922 = shalt.err (!%p3919_p4)
}
   0xb   :  { %s3969_s29 = smov 256   ;;  %s3970_s30 = smov 16  }
   0xc   :  { %41 = dma.hbm_to_vmem [thread:$0]  %s4152_s3, 16384, %s36_s25, [#allocation5], %s3969_s29, %s3969_s29, %s3970_s30  }
   0xd   :  { %s3931_s10 = scalar_lea.vmem %s22_s27, 25088  ;;  %p3936_p6 = scmp.lt.s32.totalorder %s22_s27, %s22_s27 }
   0xe   :  { %p3932_p5 = scmp.ne.s32.totalorder %s22_s27, %s3931_s10  ;;  %p3937_p7 = scmp.lt.s32.totalorder %s3931_s10, %s3931_s10 }
  0x10   :  { %p3938_p8 = por %p3937_p7, %p3936_p6 }
  0x12   :  { %p3939_p9 = pnand %p3938_p8, %p3932_p5 }
  0x14   :  { %3942 = shalt.err (!%p3939_p9)
}
  0x15   :  { %27 = dma.hbm_to_vmem [thread:$0]  %s4150_s1, 25088, %s22_s27, [#allocation3], %s3969_s29, %s3969_s29, %s3970_s30  }
  0x16   :  { %s3971_s13 = smov [#allocation6]  }
  0x17   :  { %s49_s14 = sshll.u32 %s3971_s13, 4  ;;  %s50_s14 = int_to_ptr.vmem [resolvable:$true] %s49_s14 }
  0x18   :  { %s3951_s15 = scalar_lea.vmem %s50_s14, 4096  ;;  %p3956_p11 = scmp.lt.s32.totalorder %s50_s14, %s50_s14 }
  0x19   :  { %p3952_p10 = scmp.ne.s32.totalorder %s50_s14, %s3951_s15  ;;  %p3957_p12 = scmp.lt.s32.totalorder %s3951_s15, %s3951_s15 }
  0x1b   :  { %p3958_p13 = por %p3957_p12, %p3956_p11 }
  0x1d   :  { %p3959_p0 = pnand %p3958_p13, %p3952_p10 }
  0x1f   :  { %3962 = shalt.err (!%p3959_p0)
}
  0x20   :  { %s3972_s3 = smov 64   ;;  %s3973_s16 = smov 4  }
  0x21   :  { %55 = dma.hbm_to_vmem [thread:$0]  %s4154_s5, 4096, %s50_s14, [#allocation5], %s3972_s3, %s3972_s3, %s3973_s16  }
  0x22   :  { %3963 = dma.done.wait [#allocation3], 25088  }
  0x23   :  { %3964 = vsyncadd [#allocation3], 4294942208 }
  0x24   :  { %3965 = dma.done.wait [#allocation5], 20480  }
  0x25   :  { %3966 = vsyncadd [#allocation5], 4294946816  ;;  %v3385_v0 = vld [vmem:[#allocation2 + $0xe4] ss:$16 sps:$4 sm:$0xff]   ;;  %v3389_v2 = vld [vmem:[#allocation2 + $0xe0] ss:$16 sps:$4 sm:$0xff]  }
  0x26   :  { %v3387_v1 = vld [vmem:[#allocation2 + $0x2e4] ss:$16 sps:$4 sm:$0xff]   ;;  %1291 = vmatprep.subr.bf16.mxu0 %v3385_v0  ;;  %v3390_v3 = vld [vmem:[#allocation2 + $0x2e0] ss:$16 sps:$4 sm:$0xff]   ;;  %v69_v46 = vld [vmem:[%s4149_s0 + $0x8] sm:$0xff]  ;;  %vm1287_vm0 = vcmask 130048  }
  0x27   :  { %1334 = vmatprep.subr.bf16.mxu1 %v3387_v1  ;;  %v3391_v4 = vld [vmem:[#allocation2 + $0xc4] ss:$16 sps:$4 sm:$0xff]   ;;  %1292 = vmatpush1.bf16.msra.mxu0 %v3389_v2  ;;  %v3395_v6 = vld [vmem:[#allocation2 + $0xc0] ss:$16 sps:$4 sm:$0xff]   ;;  %v71_v48 = vld [vmem:[%s4149_s0 + $0x18] sm:$0xff] }
  0x28   :  { %1335 = vmatpush1.bf16.msra.mxu1 %v3390_v3  ;;  %v3393_v5 = vld [vmem:[#allocation2 + $0x2c4] ss:$16 sps:$4 sm:$0xff]   ;;  %1293 = vmatprep.subr.bf16.mxu0 %v3391_v4  ;;  %v3396_v7 = vld [vmem:[#allocation2 + $0x2c0] ss:$16 sps:$4 sm:$0xff]  }
  0x29   :  { %1336 = vmatprep.subr.bf16.mxu1 %v3393_v5  ;;  %v3397_v8 = vld [vmem:[#allocation2 + $0xa4] ss:$16 sps:$4 sm:$0xff]   ;;  %v3401_v10 = vld [vmem:[#allocation2 + $0xa0] ss:$16 sps:$4 sm:$0xff]  }
  0x2a   :  { %v3399_v9 = vld [vmem:[#allocation2 + $0x2a4] ss:$16 sps:$4 sm:$0xff]   ;;  %v3402_v11 = vld [vmem:[#allocation2 + $0x2a0] ss:$16 sps:$4 sm:$0xff]  }
  0x2b   :  { %1294 = vmatpush1.bf16.msra.mxu0 %v3395_v6  ;;  %v3403_v12 = vld [vmem:[#allocation2 + $0x84] ss:$16 sps:$4 sm:$0xff]   ;;  %v3407_v14 = vld [vmem:[#allocation2 + $0x80] ss:$16 sps:$4 sm:$0xff]  }
  0x2c   :  { %1337 = vmatpush1.bf16.msra.mxu1 %v3396_v7  ;;  %1295 = vmatprep.subr.bf16.mxu0 %v3397_v8  ;;  %v3405_v13 = vld [vmem:[#allocation2 + $0x284] ss:$16 sps:$4 sm:$0xff]   ;;  %v3408_v15 = vld [vmem:[#allocation2 + $0x280] ss:$16 sps:$4 sm:$0xff]   ;;  %v75_v7 = vld [vmem:[%s4149_s0 + $0x38] sm:$0xff] }
  0x2d   :  { %1338 = vmatprep.subr.bf16.mxu1 %v3399_v9  ;;  %v3409_v16 = vld [vmem:[#allocation2 + $0x64] ss:$16 sps:$4 sm:$0xff]   ;;  %v3413_v18 = vld [vmem:[#allocation2 + $0x60] ss:$16 sps:$4 sm:$0xff]   ;;  %v77_v9 = vld [vmem:[%s4149_s0 + $0x48] sm:$0xff] }
  0x2e   :  { %v3411_v17 = vld [vmem:[#allocation2 + $0x264] ss:$16 sps:$4 sm:$0xff]   ;;  %v3414_v19 = vld [vmem:[#allocation2 + $0x260] ss:$16 sps:$4 sm:$0xff]  }
  0x2f   :  { %1296 = vmatpush1.bf16.msra.mxu0 %v3401_v10  ;;  %v3415_v20 = vld [vmem:[#allocation2 + $0x44] ss:$16 sps:$4 sm:$0xff]   ;;  %v3419_v22 = vld [vmem:[#allocation2 + $0x40] ss:$16 sps:$4 sm:$0xff]  }
  0x30   :  { %1339 = vmatpush1.bf16.msra.mxu1 %v3402_v11  ;;  %1297 = vmatprep.subr.bf16.mxu0 %v3403_v12  ;;  %v3417_v21 = vld [vmem:[#allocation2 + $0x244] ss:$16 sps:$4 sm:$0xff]   ;;  %v3420_v23 = vld [vmem:[#allocation2 + $0x240] ss:$16 sps:$4 sm:$0xff]  }
  0x31   :  { %1340 = vmatprep.subr.bf16.mxu1 %v3405_v13  ;;  %v3421_v24 = vld [vmem:[#allocation2 + $0x24] ss:$16 sps:$4 sm:$0xff]   ;;  %v3425_v26 = vld [vmem:[#allocation2 + $0x20] ss:$16 sps:$4 sm:$0xff]  }
  0x32   :  { %v3423_v25 = vld [vmem:[#allocation2 + $0x224] ss:$16 sps:$4 sm:$0xff]   ;;  %v3426_v27 = vld [vmem:[#allocation2 + $0x220] ss:$16 sps:$4 sm:$0xff]  }
  0x33   :  { %1298 = vmatpush1.bf16.msra.mxu0 %v3407_v14  ;;  %v3427_v28 = vld [vmem:[#allocation2 + $0x4] ss:$16 sps:$4 sm:$0xff]   ;;  %v3431_v30 = vld [vmem:[#allocation2] ss:$16 sps:$4 sm:$0xff]  }
  0x34   :  { %1341 = vmatpush1.bf16.msra.mxu1 %v3408_v15  ;;  %1299 = vmatprep.subr.bf16.mxu0 %v3409_v16  ;;  %v3429_v29 = vld [vmem:[#allocation2 + $0x204] ss:$16 sps:$4 sm:$0xff]   ;;  %v3432_v31 = vld [vmem:[#allocation2 + $0x200] ss:$16 sps:$4 sm:$0xff]  }
  0x35   :  { %1342 = vmatprep.subr.bf16.mxu1 %v3411_v17  ;;  %v3433_v32 = vld [vmem:[#allocation2 + $0x1e4] ss:$16 sps:$4 sm:$0xff]   ;;  %v3437_v34 = vld [vmem:[#allocation2 + $0x1e0] ss:$16 sps:$4 sm:$0xff]   ;;  %v3492_v17 = vld [vmem:[#allocation2 + $0xec] ss:$16 sps:$4 sm:$0xff]  }
  0x36   :  { %v3435_v33 = vld [vmem:[#allocation2 + $0x3e4] ss:$16 sps:$4 sm:$0xff]   ;;  %v3438_v35 = vld [vmem:[#allocation2 + $0x3e0] ss:$16 sps:$4 sm:$0xff]  }
  0x37   :  { %1300 = vmatpush1.bf16.msra.mxu0 %v3413_v18  ;;  %v3439_v36 = vld [vmem:[#allocation2 + $0x1c4] ss:$16 sps:$4 sm:$0xff]   ;;  %v3443_v38 = vld [vmem:[#allocation2 + $0x1c0] ss:$16 sps:$4 sm:$0xff]  }
  0x38   :  { %1343 = vmatpush1.bf16.msra.mxu1 %v3414_v19  ;;  %1301 = vmatprep.subr.bf16.mxu0 %v3415_v20  ;;  %v3441_v37 = vld [vmem:[#allocation2 + $0x3c4] ss:$16 sps:$4 sm:$0xff]   ;;  %v3444_v39 = vld [vmem:[#allocation2 + $0x3c0] ss:$16 sps:$4 sm:$0xff]   ;;  %v81_v20 = vld [vmem:[%s4149_s0 + $0x68] sm:$0xff] }
  0x39   :  { %1344 = vmatprep.subr.bf16.mxu1 %v3417_v21  ;;  %v3445_v40 = vld [vmem:[#allocation2 + $0x1a4] ss:$16 sps:$4 sm:$0xff]   ;;  %v3449_v42 = vld [vmem:[#allocation2 + $0x1a0] ss:$16 sps:$4 sm:$0xff]   ;;  %v3974_v21 = vmov 0  }
  0x3a   :  { %v3447_v41 = vld [vmem:[#allocation2 + $0x3a4] ss:$16 sps:$4 sm:$0xff]   ;;  %v3450_v43 = vld [vmem:[#allocation2 + $0x3a0] ss:$16 sps:$4 sm:$0xff]  }
  0x3b   :  { %1302 = vmatpush1.bf16.msra.mxu0 %v3419_v22  ;;  %v3451_v44 = vld [vmem:[#allocation2 + $0x184] ss:$16 sps:$4 sm:$0xff]   ;;  %v3455_v50 = vld [vmem:[#allocation2 + $0x180] ss:$16 sps:$4 sm:$0xff]  }
  0x3c   :  { %1345 = vmatpush1.bf16.msra.mxu1 %v3420_v23  ;;  %1303 = vmatprep.subr.bf16.mxu0 %v3421_v24  ;;  %v3453_v45 = vld [vmem:[#allocation2 + $0x384] ss:$16 sps:$4 sm:$0xff]   ;;  %v3456_v51 = vld [vmem:[#allocation2 + $0x380] ss:$16 sps:$4 sm:$0xff]   ;;  %v3490_v24 = vld [vmem:[#allocation2 + $0xe8] ss:$16 sps:$4 sm:$0xff]  }
  0x3d   :  { %1346 = vmatprep.subr.bf16.mxu1 %v3423_v25  ;;  %v76_v47 = vld [vmem:[%s4149_s0 + $0x40] sm:$0xff]  ;;  %v78_v49 = vld [vmem:[%s4149_s0 + $0x50] sm:$0xff] }
  0x3e   :  { %v3457_v52 = vld [vmem:[#allocation2 + $0x164] ss:$16 sps:$4 sm:$0xff]   ;;  %v4036_v53 = vpack.c.bf16 %v76_v47, %v69_v46  ;;  %v4038_v54 = vpack.c.bf16 %v78_v49, %v71_v48  ;;  %v3461_v56 = vld [vmem:[#allocation2 + $0x160] ss:$16 sps:$4 sm:$0xff]   ;;  %v3520_v47 = vld [vmem:[#allocation2 + $0x48] ss:$16 sps:$4 sm:$0xff]  }
  0x3f   :  { %1304 = vmatpush1.bf16.msra.mxu0 %v3425_v26  ;;  %v3459_v55 = vld [vmem:[#allocation2 + $0x364] ss:$16 sps:$4 sm:$0xff]   ;;  %v3462_v57 = vld [vmem:[#allocation2 + $0x360] ss:$16 sps:$4 sm:$0xff]   ;;  %v3498_v26 = vld [vmem:[#allocation2 + $0xcc] ss:$16 sps:$4 sm:$0xff]  }
  0x40   :  { %1347 = vmatpush1.bf16.msra.mxu1 %v3426_v27  ;;  %1305 = vmatprep.subr.bf16.mxu0 %v3427_v28  ;;  %v3463_v58 = vld [vmem:[#allocation2 + $0x144] ss:$16 sps:$4 sm:$0xff]   ;;  %v3467_v60 = vld [vmem:[#allocation2 + $0x140] ss:$16 sps:$4 sm:$0xff]   ;;  %v3496_v28 = vld [vmem:[#allocation2 + $0xc8] ss:$16 sps:$4 sm:$0xff]  }
  0x41   :  { %1348 = vmatprep.subr.bf16.mxu1 %v3429_v29  ;;  %1323 = vmatprep.mubr.bf16.mxu0 %v4036_v53  ;;  %v3465_v59 = vld [vmem:[#allocation2 + $0x344] ss:$16 sps:$4 sm:$0xff]   ;;  %v3468_v61 = vld [vmem:[#allocation2 + $0x340] ss:$16 sps:$4 sm:$0xff]   ;;  %v3528_v49 = vld [vmem:[#allocation2 + $0x2c] ss:$16 sps:$4 sm:$0xff]  }
  0x42   :  { %1366 = vmatprep.mubr.bf16.mxu1 %v4038_v54  ;;  %v3469_v62 = vld [vmem:[#allocation2 + $0x124] ss:$16 sps:$4 sm:$0xff]   ;;  %v3473_v0 = vld [vmem:[#allocation2 + $0x120] ss:$16 sps:$4 sm:$0xff]  }
  0x43   :  { %1306 = vmatpush1.bf16.msra.mxu0 %v3431_v30  ;;  %v3471_v63 = vld [vmem:[#allocation2 + $0x324] ss:$16 sps:$4 sm:$0xff]   ;;  %v3474_v1 = vld [vmem:[#allocation2 + $0x320] ss:$16 sps:$4 sm:$0xff]   ;;  %v3504_v30 = vld [vmem:[#allocation2 + $0xac] ss:$16 sps:$4 sm:$0xff]  }
  0x44   :  { %1349 = vmatpush1.bf16.msra.mxu1 %v3432_v31  ;;  %1307 = vmatprep.subr.bf16.mxu0 %v3433_v32  ;;  %v3475_v2 = vld [vmem:[#allocation2 + $0x104] ss:$16 sps:$4 sm:$0xff]   ;;  %v3479_v4 = vld [vmem:[#allocation2 + $0x100] ss:$16 sps:$4 sm:$0xff]   ;;  %v3502_v32 = vld [vmem:[#allocation2 + $0xa8] ss:$16 sps:$4 sm:$0xff]  }
  0x45   :  { %1350 = vmatprep.subr.bf16.mxu1 %v3435_v33  ;;  %v3477_v3 = vld [vmem:[#allocation2 + $0x304] ss:$16 sps:$4 sm:$0xff]   ;;  %v3480_v5 = vld [vmem:[#allocation2 + $0x300] ss:$16 sps:$4 sm:$0xff]  }
  0x46   :  { %v68_v6 = vld [vmem:[%s4149_s0] sm:$0xff]  ;;  %v70_v8 = vld [vmem:[%s4149_s0 + $0x10] sm:$0xff] }
  0x47   :  { %1308 = vmatpush2.bf16.msra.mxu0 %v3437_v34  ;;  %v3483_v10 = vld [vmem:[#allocation2 + $0x4e4] ss:$16 sps:$4 sm:$0xff]   ;;  %v4054_v12 = vpack.c.bf16 %v75_v7, %v68_v6  ;;  %v4056_v13 = vpack.c.bf16 %v77_v9, %v70_v8  ;;  %v3481_v14 = vld [vmem:[#allocation2 + $0x4e0] ss:$16 sps:$4 sm:$0xff]   ;;  %v3510_v34 = vld [vmem:[#allocation2 + $0x8c] ss:$16 sps:$4 sm:$0xff]  }
  0x48   :  { %1351 = vmatpush2.bf16.msra.mxu1 %v3438_v35  ;;  %1309 = vmatprep.subr.bf16.mxu0 %v3439_v36  ;;  %v3486_v11 = vld [vmem:[#allocation2 + $0x604] ss:$16 sps:$4 sm:$0xff]   ;;  %v3484_v15 = vld [vmem:[#allocation2 + $0x600] ss:$16 sps:$4 sm:$0xff]   ;;  %v3508_v36 = vld [vmem:[#allocation2 + $0x88] ss:$16 sps:$4 sm:$0xff]  }
  0x49   :  { %1352 = vmatprep.subr.bf16.mxu1 %v3441_v37  ;;  %v3489_v16 = vld [vmem:[#allocation2 + $0x4c4] ss:$16 sps:$4 sm:$0xff]   ;;  %v3487_v18 = vld [vmem:[#allocation2 + $0x4c0] ss:$16 sps:$4 sm:$0xff]   ;;  %v3558_v6 = vld [vmem:[#allocation2 + $0x18c] ss:$16 sps:$4 sm:$0xff]  }
  0x4a   :  { %v74_v19 = vld [vmem:[%s4149_s0 + $0x30] sm:$0xff]  ;;  %v3556_v8 = vld [vmem:[#allocation2 + $0x188] ss:$16 sps:$4 sm:$0xff]  }
  0x4b   :  { %1310 = vmatpush2.bf16.msra.mxu0 %v3443_v38  ;;  %v3495_v22 = vld [vmem:[#allocation2 + $0x4a4] ss:$16 sps:$4 sm:$0xff]   ;;  %v4067_v23 = vpack.c.bf16 %v81_v20, %v74_v19  ;;  %v3493_v25 = vld [vmem:[#allocation2 + $0x4a0] ss:$16 sps:$4 sm:$0xff]   ;;  %v3516_v38 = vld [vmem:[#allocation2 + $0x6c] ss:$16 sps:$4 sm:$0xff]  }
  0x4c   :  { %1353 = vmatpush2.bf16.msra.mxu1 %v3444_v39  ;;  %1311 = vmatprep.subr.bf16.mxu0 %v3445_v40  ;;  %v3501_v27 = vld [vmem:[#allocation2 + $0x484] ss:$16 sps:$4 sm:$0xff]   ;;  %v3499_v29 = vld [vmem:[#allocation2 + $0x480] ss:$16 sps:$4 sm:$0xff]   ;;  %v3514_v40 = vld [vmem:[#allocation2 + $0x68] ss:$16 sps:$4 sm:$0xff]  }
  0x4d   :  { %1354 = vmatprep.subr.bf16.mxu1 %v3447_v41  ;;  %v3507_v31 = vld [vmem:[#allocation2 + $0x464] ss:$16 sps:$4 sm:$0xff]   ;;  %v3505_v33 = vld [vmem:[#allocation2 + $0x460] ss:$16 sps:$4 sm:$0xff]   ;;  %v73_v41 = vld [vmem:[%s4149_s0 + $0x28] sm:$0xff] }
  0x4e   :  { %v3513_v35 = vld [vmem:[#allocation2 + $0x444] ss:$16 sps:$4 sm:$0xff]   ;;  %v3511_v37 = vld [vmem:[#allocation2 + $0x440] ss:$16 sps:$4 sm:$0xff]  }
  0x4f   :  { %1312 = vmatpush2.bf16.msra.mxu0 %v3449_v42  ;;  %v3519_v39 = vld [vmem:[#allocation2 + $0x424] ss:$16 sps:$4 sm:$0xff]   ;;  %v3523_v48 = vld [vmem:[#allocation2 + $0x400] ss:$16 sps:$4 sm:$0xff]  }
  0x50   :  { %1355 = vmatpush2.bf16.msra.mxu1 %v3450_v43  ;;  %1313 = vmatprep.subr.bf16.mxu0 %v3451_v44  ;;  %v80_v42 = vld [vmem:[%s4149_s0 + $0x60] sm:$0xff] }
  0x51   :  { %1356 = vmatprep.subr.bf16.mxu1 %v3453_v45  ;;  %v3517_v43 = vld [vmem:[#allocation2 + $0x420] ss:$16 sps:$4 sm:$0xff]   ;;  %v4078_v44 = vpack.c.bf16 %v80_v42, %v73_v41  ;;  %v3522_v45 = vld [vmem:[#allocation2 + $0x4c] ss:$16 sps:$4 sm:$0xff]   ;;  %v3525_v46 = vld [vmem:[#allocation2 + $0x404] ss:$16 sps:$4 sm:$0xff]  }
  0x52   :  { %v3561_v7 = vld [vmem:[#allocation2 + $0x544] ss:$16 sps:$4 sm:$0xff]   ;;  %v3559_v9 = vld [vmem:[#allocation2 + $0x540] ss:$16 sps:$4 sm:$0xff]   ;;  %v3600_v41 = vld [vmem:[#allocation2 + $0x4ac] ss:$16 sps:$4 sm:$0xff]  }
  0x53   :  { %1314 = vmatpush2.bf16.msra.mxu0 %v3455_v50  ;;  %v3531_v50 = vld [vmem:[#allocation2 + $0x5e4] ss:$16 sps:$4 sm:$0xff]   ;;  %v3571_v19 = vld [vmem:[#allocation2 + $0x500] ss:$16 sps:$4 sm:$0xff]   ;;  %v3603_v42 = vld [vmem:[#allocation2 + $0x26c] ss:$16 sps:$4 sm:$0xff]  }
  0x54   :  { %1357 = vmatpush2.bf16.msra.mxu1 %v3456_v51  ;;  %1315 = vmatprep.subr.bf16.mxu0 %v3457_v52  ;;  %v3526_v51 = vld [vmem:[#allocation2 + $0x28] ss:$16 sps:$4 sm:$0xff]   ;;  %v3529_v52 = vld [vmem:[#allocation2 + $0x5e0] ss:$16 sps:$4 sm:$0xff]  }
  0x55   :  { %1358 = vmatprep.subr.bf16.mxu1 %v3459_v55  ;;  %v3537_v55 = vld [vmem:[#allocation2 + $0x5c4] ss:$16 sps:$4 sm:$0xff]  }
  0x56   :  { %v72_v20 = vld [vmem:[%s4149_s0 + $0x20] sm:$0xff] }
  0x57   :  { %1316 = vmatpush2.bf16.msra.mxu0 %v3461_v56  ;;  %v3532_v56 = vld [vmem:[#allocation2 + $0x8] ss:$16 sps:$4 sm:$0xff]  }
  0x58   :  { %1359 = vmatpush2.bf16.msra.mxu1 %v3462_v57  ;;  %1317 = vmatprep.subr.bf16.mxu0 %v3463_v58  ;;  %v3535_v57 = vld [vmem:[#allocation2 + $0x5c0] ss:$16 sps:$4 sm:$0xff]   ;;  %v3540_v58 = vld [vmem:[#allocation2 + $0x1ec] ss:$16 sps:$4 sm:$0xff]  }
  0x59   :  { %1360 = vmatprep.subr.bf16.mxu1 %v3465_v59  ;;  %v3543_v59 = vld [vmem:[#allocation2 + $0x5a4] ss:$16 sps:$4 sm:$0xff]  }
  0x5b   :  { %1318 = vmatpush2.bf16.msra.mxu0 %v3467_v60  ;;  %v3538_v60 = vld [vmem:[#allocation2 + $0x1e8] ss:$16 sps:$4 sm:$0xff]  }
  0x5c   :  { %1361 = vmatpush2.bf16.msra.mxu1 %v3468_v61  ;;  %1319 = vmatprep.subr.bf16.mxu0 %v3469_v62  ;;  %v3541_v61 = vld [vmem:[#allocation2 + $0x5a0] ss:$16 sps:$4 sm:$0xff]   ;;  %v3546_v62 = vld [vmem:[#allocation2 + $0x1cc] ss:$16 sps:$4 sm:$0xff]  }
  0x5d   :  { %1362 = vmatprep.subr.bf16.mxu1 %v3471_v63  ;;  %v3549_v63 = vld [vmem:[#allocation2 + $0x584] ss:$16 sps:$4 sm:$0xff]  }
  0x5f   :  { %1320 = vmatpush2.bf16.msra.mxu0 %v3473_v0  ;;  %v3544_v0 = vld [vmem:[#allocation2 + $0x1c8] ss:$16 sps:$4 sm:$0xff]  }
  0x60   :  { %1363 = vmatpush2.bf16.msra.mxu1 %v3474_v1  ;;  %1321 = vmatprep.subr.bf16.mxu0 %v3475_v2  ;;  %v3547_v1 = vld [vmem:[#allocation2 + $0x580] ss:$16 sps:$4 sm:$0xff]   ;;  %v3552_v2 = vld [vmem:[#allocation2 + $0x1ac] ss:$16 sps:$4 sm:$0xff]  }
  0x61   :  { %1364 = vmatprep.subr.bf16.mxu1 %v3477_v3  ;;  %v3555_v3 = vld [vmem:[#allocation2 + $0x564] ss:$16 sps:$4 sm:$0xff]  }
  0x63   :  { %1322 = vmatpush2.bf16.msra.mxu0 %v3479_v4  ;;  %v3550_v4 = vld [vmem:[#allocation2 + $0x1a8] ss:$16 sps:$4 sm:$0xff]  }
  0x64   :  { %1365 = vmatpush2.bf16.msra.mxu1 %v3480_v5  ;;  %1377 = vmatprep.subr.bf16.mxu0 %v3483_v10  ;;  %v3553_v5 = vld [vmem:[#allocation2 + $0x560] ss:$16 sps:$4 sm:$0xff]   ;;  %v3564_v10 = vld [vmem:[#allocation2 + $0x16c] ss:$16 sps:$4 sm:$0xff]  }
  0x65   :  { %1434 = vmatprep.subr.bf16.mxu1 %v3486_v11  ;;  %v3567_v11 = vld [vmem:[#allocation2 + $0x524] ss:$16 sps:$4 sm:$0xff]  }
  0x66   :  { %1324 = vmatmul.mubr.bf16.vlgmr.msra.gmra.mxu0 %v4054_v12 }
  0x67   :  { %1367 = vmatmul.mubr.bf16.vlgmr.msra.gmra.mxu1 %v4056_v13  ;;  %1378 = vmatpush1.bf16.msra.mxu0 %v3481_v14  ;;  %v3562_v14 = vld [vmem:[#allocation2 + $0x168] ss:$16 sps:$4 sm:$0xff]  }
  0x68   :  { %1435 = vmatpush1.bf16.msra.mxu1 %v3484_v15  ;;  %1379 = vmatprep.subr.bf16.mxu0 %v3489_v16  ;;  %v3565_v15 = vld [vmem:[#allocation2 + $0x520] ss:$16 sps:$4 sm:$0xff]   ;;  %v3570_v16 = vld [vmem:[#allocation2 + $0x14c] ss:$16 sps:$4 sm:$0xff]  }
  0x69   :  { %1452 = vmatprep.mubr.bf16.mxu1 %v3974_v21  ;;  %1463 = vmatprep.subr.bf16.mxu1 %v3492_v17  ;;  %v3573_v17 = vld [vmem:[#allocation2 + $0x504] ss:$16 sps:$4 sm:$0xff]  }
  0x6a   :  { %1409 = vmatprep.mubr.bf16.mxu0 %v4078_v44 }
  0x6b   :  { %1380 = vmatpush1.bf16.msra.mxu0 %v3487_v18  ;;  %v3568_v18 = vld [vmem:[#allocation2 + $0x148] ss:$16 sps:$4 sm:$0xff]  }
  0x6c   :  { %1381 = vmatprep.subr.bf16.mxu0 %v3495_v22  ;;  %v79_v22 = vld [vmem:[%s4149_s0 + $0x58] sm:$0xff] }
  0x6f   :  { %3170 = vmatmul.mubr.msk.bf16.vlgmr.msra.gmra.mxu1 %vm1287_vm0, %v4067_v23  ;;  %1382 = vmatpush1.bf16.msra.mxu0 %v3493_v25  ;;  %v3579_v25 = vld [vmem:[#allocation2 + $0x2ec] ss:$16 sps:$4 sm:$0xff]  }
  0x70   :  { %1464 = vmatpush1.bf16.msra.mxu1 %v3490_v24  ;;  %1383 = vmatprep.subr.bf16.mxu0 %v3501_v27  ;;  %v3576_v24 = vld [vmem:[#allocation2 + $0x12c] ss:$16 sps:$4 sm:$0xff]   ;;  %v3574_v27 = vld [vmem:[#allocation2 + $0x128] ss:$16 sps:$4 sm:$0xff]  }
  0x71   :  { %1465 = vmatprep.subr.bf16.mxu1 %v3498_v26  ;;  %1495 = vmatprep.mubr.bf16.mxu1 %v4036_v53  ;;  %v3534_v53 = vld [vmem:[#allocation2 + $0xc] ss:$16 sps:$4 sm:$0xff]   ;;  %v4087_v26 = vpack.c.bf16 %v79_v22, %v72_v20  ;;  %v3658_v20 = vld [vmem:[#allocation2 + $0x568] ss:$16 sps:$4 sm:$0xff]  }
  0x72   :  { %v3661_v22 = vld [vmem:[#allocation2 + $0x328] ss:$16 sps:$4 sm:$0xff]  }
  0x73   :  { %1384 = vmatpush1.bf16.msra.mxu0 %v3499_v29  ;;  %v3582_v29 = vld [vmem:[#allocation2 + $0x10c] ss:$16 sps:$4 sm:$0xff]  }
  0x74   :  { %1466 = vmatpush1.bf16.msra.mxu1 %v3496_v28  ;;  %1385 = vmatprep.subr.bf16.mxu0 %v3507_v31  ;;  %v3577_v28 = vld [vmem:[#allocation2 + $0x2e8] ss:$16 sps:$4 sm:$0xff]  }
  0x75   :  { %1467 = vmatprep.subr.bf16.mxu1 %v3504_v30  ;;  %v3585_v30 = vld [vmem:[#allocation2 + $0x2cc] ss:$16 sps:$4 sm:$0xff]   ;;  %v3580_v31 = vld [vmem:[#allocation2 + $0x108] ss:$16 sps:$4 sm:$0xff]  }
  0x77   :  { %1386 = vmatpush1.bf16.msra.mxu0 %v3505_v33  ;;  %v3588_v33 = vld [vmem:[#allocation2 + $0x4ec] ss:$16 sps:$4 sm:$0xff]  }
  0x78   :  { %1468 = vmatpush1.bf16.msra.mxu1 %v3502_v32  ;;  %1387 = vmatprep.subr.bf16.mxu0 %v3513_v35  ;;  %v3583_v32 = vld [vmem:[#allocation2 + $0x2c8] ss:$16 sps:$4 sm:$0xff]  }
  0x79   :  { %1469 = vmatprep.subr.bf16.mxu1 %v3510_v34  ;;  %v3591_v34 = vld [vmem:[#allocation2 + $0x2ac] ss:$16 sps:$4 sm:$0xff]   ;;  %v3586_v35 = vld [vmem:[#allocation2 + $0x4e8] ss:$16 sps:$4 sm:$0xff]  }
  0x7b   :  { %1388 = vmatpush1.bf16.msra.mxu0 %v3511_v37  ;;  %v3594_v37 = vld [vmem:[#allocation2 + $0x4cc] ss:$16 sps:$4 sm:$0xff]  }
  0x7c   :  { %1470 = vmatpush1.bf16.msra.mxu1 %v3508_v36  ;;  %1389 = vmatprep.subr.bf16.mxu0 %v3519_v39  ;;  %v3589_v36 = vld [vmem:[#allocation2 + $0x2a8] ss:$16 sps:$4 sm:$0xff]  }
  0x7d   :  { %1471 = vmatprep.subr.bf16.mxu1 %v3516_v38  ;;  %v3597_v38 = vld [vmem:[#allocation2 + $0x28c] ss:$16 sps:$4 sm:$0xff]   ;;  %v3592_v39 = vld [vmem:[#allocation2 + $0x4c8] ss:$16 sps:$4 sm:$0xff]  }
  0x7f   :  { %1390 = vmatpush1.bf16.msra.mxu0 %v3517_v43  ;;  %v3598_v43 = vld [vmem:[#allocation2 + $0x4a8] ss:$16 sps:$4 sm:$0xff]  }
  0x80   :  { %1472 = vmatpush1.bf16.msra.mxu1 %v3514_v40  ;;  %1391 = vmatprep.subr.bf16.mxu0 %v3525_v46  ;;  %v3595_v40 = vld [vmem:[#allocation2 + $0x288] ss:$16 sps:$4 sm:$0xff]   ;;  %v3609_v46 = vld [vmem:[#allocation2 + $0x24c] ss:$16 sps:$4 sm:$0xff]  }
  0x81   :  { %1473 = vmatprep.subr.bf16.mxu1 %v3522_v45  ;;  %v3601_v45 = vld [vmem:[#allocation2 + $0x268] ss:$16 sps:$4 sm:$0xff]  }
  0x83   :  { %1392 = vmatpush1.bf16.msra.mxu0 %v3523_v48  ;;  %v3612_v48 = vld [vmem:[#allocation2 + $0x46c] ss:$16 sps:$4 sm:$0xff]  }
  0x84   :  { %1474 = vmatpush1.bf16.msra.mxu1 %v3520_v47  ;;  %1393 = vmatprep.subr.bf16.mxu0 %v3531_v50  ;;  %v3604_v47 = vld [vmem:[#allocation2 + $0x488] ss:$16 sps:$4 sm:$0xff]  }
  0x85   :  { %1475 = vmatprep.subr.bf16.mxu1 %v3528_v49  ;;  %v3615_v49 = vld [vmem:[#allocation2 + $0x22c] ss:$16 sps:$4 sm:$0xff]   ;;  %v3610_v50 = vld [vmem:[#allocation2 + $0x468] ss:$16 sps:$4 sm:$0xff]  }
  0x87   :  { %1394 = vmatpush2.bf16.msra.mxu0 %v3529_v52  ;;  %v3621_v52 = vld [vmem:[#allocation2 + $0x20c] ss:$16 sps:$4 sm:$0xff]  }
  0x88   :  { %1476 = vmatpush1.bf16.msra.mxu1 %v3526_v51  ;;  %1395 = vmatprep.subr.bf16.mxu0 %v3537_v55  ;;  %v3613_v51 = vld [vmem:[#allocation2 + $0x228] ss:$16 sps:$4 sm:$0xff]  }
  0x89   :  { %1477 = vmatprep.subr.bf16.mxu1 %v3534_v53  ;;  %v3616_v53 = vld [vmem:[#allocation2 + $0x448] ss:$16 sps:$4 sm:$0xff]  }
  0x8a   :  { %v3619_v55 = vld [vmem:[#allocation2 + $0x208] ss:$16 sps:$4 sm:$0xff]  }
  0x8b   :  { %1396 = vmatpush2.bf16.msra.mxu0 %v3535_v57  ;;  %v3627_v57 = vld [vmem:[#allocation2 + $0x3ec] ss:$16 sps:$4 sm:$0xff]  }
  0x8c   :  { %1478 = vmatpush1.bf16.msra.mxu1 %v3532_v56  ;;  %1397 = vmatprep.subr.bf16.mxu0 %v3543_v59  ;;  %v3624_v56 = vld [vmem:[#allocation2 + $0x42c] ss:$16 sps:$4 sm:$0xff]   ;;  %v3625_v59 = vld [vmem:[#allocation2 + $0x3e8] ss:$16 sps:$4 sm:$0xff]  }
  0x8d   :  { %1479 = vmatprep.subr.bf16.mxu1 %v3540_v58  ;;  %v3622_v58 = vld [vmem:[#allocation2 + $0x428] ss:$16 sps:$4 sm:$0xff]  }
  0x8f   :  { %1398 = vmatpush2.bf16.msra.mxu0 %v3541_v61  ;;  %v3633_v61 = vld [vmem:[#allocation2 + $0x3cc] ss:$16 sps:$4 sm:$0xff]  }
  0x90   :  { %1480 = vmatpush2.bf16.msra.mxu1 %v3538_v60  ;;  %1399 = vmatprep.subr.bf16.mxu0 %v3549_v63  ;;  %v3630_v60 = vld [vmem:[#allocation2 + $0x40c] ss:$16 sps:$4 sm:$0xff]   ;;  %v3631_v63 = vld [vmem:[#allocation2 + $0x3c8] ss:$16 sps:$4 sm:$0xff]  }
  0x91   :  { %1481 = vmatprep.subr.bf16.mxu1 %v3546_v62  ;;  %v3628_v62 = vld [vmem:[#allocation2 + $0x408] ss:$16 sps:$4 sm:$0xff]  }
  0x93   :  { %1400 = vmatpush2.bf16.msra.mxu0 %v3547_v1  ;;  %v3639_v1 = vld [vmem:[#allocation2 + $0x3ac] ss:$16 sps:$4 sm:$0xff]  }
  0x94   :  { %1482 = vmatpush2.bf16.msra.mxu1 %v3544_v0  ;;  %1401 = vmatprep.subr.bf16.mxu0 %v3555_v3  ;;  %v3636_v0 = vld [vmem:[#allocation2 + $0x5ec] ss:$16 sps:$4 sm:$0xff]   ;;  %v3637_v3 = vld [vmem:[#allocation2 + $0x3a8] ss:$16 sps:$4 sm:$0xff]  }
  0x95   :  { %1483 = vmatprep.subr.bf16.mxu1 %v3552_v2  ;;  %v3634_v2 = vld [vmem:[#allocation2 + $0x5e8] ss:$16 sps:$4 sm:$0xff]  }
  0x97   :  { %1402 = vmatpush2.bf16.msra.mxu0 %v3553_v5  ;;  %v3645_v5 = vld [vmem:[#allocation2 + $0x38c] ss:$16 sps:$4 sm:$0xff]  }
  0x98   :  { %1484 = vmatpush2.bf16.msra.mxu1 %v3550_v4  ;;  %1403 = vmatprep.subr.bf16.mxu0 %v3561_v7  ;;  %v3642_v4 = vld [vmem:[#allocation2 + $0x5cc] ss:$16 sps:$4 sm:$0xff]   ;;  %v3643_v7 = vld [vmem:[#allocation2 + $0x388] ss:$16 sps:$4 sm:$0xff]  }
  0x99   :  { %1485 = vmatprep.subr.bf16.mxu1 %v3558_v6  ;;  %v3640_v6 = vld [vmem:[#allocation2 + $0x5c8] ss:$16 sps:$4 sm:$0xff]  }
  0x9b   :  { %1404 = vmatpush2.bf16.msra.mxu0 %v3559_v9  ;;  %v3651_v9 = vld [vmem:[#allocation2 + $0x36c] ss:$16 sps:$4 sm:$0xff]  }
  0x9c   :  { %1486 = vmatpush2.bf16.msra.mxu1 %v3556_v8  ;;  %1405 = vmatprep.subr.bf16.mxu0 %v3567_v11  ;;  %v3648_v8 = vld [vmem:[#allocation2 + $0x5ac] ss:$16 sps:$4 sm:$0xff]   ;;  %v3649_v11 = vld [vmem:[#allocation2 + $0x368] ss:$16 sps:$4 sm:$0xff]  }
  0x9d   :  { %1487 = vmatprep.subr.bf16.mxu1 %v3564_v10  ;;  %v3646_v10 = vld [vmem:[#allocation2 + $0x5a8] ss:$16 sps:$4 sm:$0xff]  }
  0x9f   :  { %1406 = vmatpush2.bf16.msra.mxu0 %v3565_v15  ;;  %v3657_v15 = vld [vmem:[#allocation2 + $0x34c] ss:$16 sps:$4 sm:$0xff]  }
  0xa0   :  { %1488 = vmatpush2.bf16.msra.mxu1 %v3562_v14  ;;  %1407 = vmatprep.subr.bf16.mxu0 %v3573_v17  ;;  %v3654_v14 = vld [vmem:[#allocation2 + $0x58c] ss:$16 sps:$4 sm:$0xff]   ;;  %v3655_v17 = vld [vmem:[#allocation2 + $0x348] ss:$16 sps:$4 sm:$0xff]  }
  0xa1   :  { %1489 = vmatprep.subr.bf16.mxu1 %v3570_v16  ;;  %v3652_v16 = vld [vmem:[#allocation2 + $0x588] ss:$16 sps:$4 sm:$0xff]  }
  0xa3   :  { %1408 = vmatpush2.bf16.msra.mxu0 %v3571_v19  ;;  %v3663_v19 = vld [vmem:[#allocation2 + $0x32c] ss:$16 sps:$4 sm:$0xff]  }
  0xa4   :  { %1490 = vmatpush2.bf16.msra.mxu1 %v3568_v18  ;;  %1506 = vmatprep.subr.bf16.mxu0 %v3579_v25  ;;  %v3660_v18 = vld [vmem:[#allocation2 + $0x56c] ss:$16 sps:$4 sm:$0xff]  }
  0xa5   :  { %1491 = vmatprep.subr.bf16.mxu1 %v3576_v24  ;;  %v3666_v24 = vld [vmem:[#allocation2 + $0x54c] ss:$16 sps:$4 sm:$0xff]  }
  0xa6   :  { %1410 = vmatmul.mubr.bf16.vlgmr.msra.gmra.mxu0 %v4087_v26  ;;  %v3669_v25 = vld [vmem:[#allocation2 + $0x30c] ss:$16 sps:$4 sm:$0xff]  }
  0xa7   :  { %1507 = vmatpush1.bf16.msra.mxu0 %v3577_v28  ;;  %1538 = vmatprep.mubr.bf16.mxu0 %v4038_v54  ;;  %v3606_v54 = vld [vmem:[#allocation2 + $0x48c] ss:$16 sps:$4 sm:$0xff]   ;;  %v3667_v28 = vld [vmem:[#allocation2 + $0x308] ss:$16 sps:$4 sm:$0xff]  }
  0xa8   :  { %1492 = vmatpush2.bf16.msra.mxu1 %v3574_v27  ;;  %1508 = vmatprep.subr.bf16.mxu0 %v3585_v30  ;;  %v3664_v27 = vld [vmem:[#allocation2 + $0x548] ss:$16 sps:$4 sm:$0xff]   ;;  %v3675_v30 = vld [vmem:[#allocation2 + $0x60c] ss:$16 sps:$4 sm:$0xff]  }
  0xa9   :  { %1493 = vmatprep.subr.bf16.mxu1 %v3582_v29  ;;  %v3672_v29 = vld [vmem:[#allocation2 + $0x52c] ss:$16 sps:$4 sm:$0xff]  }
  0xab   :  { %1509 = vmatpush1.bf16.msra.mxu0 %v3583_v32  ;;  %v3673_v32 = vld [vmem:[#allocation2 + $0x608] ss:$16 sps:$4 sm:$0xff]  }
  0xac   :  { %1494 = vmatpush2.bf16.msra.mxu1 %v3580_v31  ;;  %1510 = vmatprep.subr.bf16.mxu0 %v3591_v34  ;;  %v3670_v31 = vld [vmem:[#allocation2 + $0x528] ss:$16 sps:$4 sm:$0xff]   ;;  %v3681_v34 = vld [vmem:[#allocation4 + $0xe4] ss:$16 sps:$4 sm:$0xff]  }
  0xad   :  { %1549 = vmatprep.subr.bf16.mxu1 %v3588_v33  ;;  %v3678_v33 = vld [vmem:[#allocation2 + $0x50c] ss:$16 sps:$4 sm:$0xff]  }
  0xaf   :  { %1496 = vmatmul.mubr.bf16.vlgmr.msra.gmra.mxu1 %v4054_v12  ;;  %1511 = vmatpush1.bf16.msra.mxu0 %v3589_v36  ;;  %v3607_v12 = vld [vmem:[#allocation2 + $0x248] ss:$16 sps:$4 sm:$0xff]   ;;  %v3679_v36 = vld [vmem:[#allocation4 + $0xe0] ss:$16 sps:$4 sm:$0xff]  }
  0xb0   :  { %1550 = vmatpush1.bf16.msra.mxu1 %v3586_v35  ;;  %1512 = vmatprep.subr.bf16.mxu0 %v3597_v38  ;;  %v3676_v35 = vld [vmem:[#allocation2 + $0x508] ss:$16 sps:$4 sm:$0xff]   ;;  %v3682_v38 = vld [vmem:[#allocation4 + $0xc0] ss:$16 sps:$4 sm:$0xff]  }
  0xb1   :  { %1551 = vmatprep.subr.bf16.mxu1 %v3594_v37  ;;  %1581 = vmatprep.mubr.bf16.mxu1 %v4078_v44  ;;  %v3618_v44 = vld [vmem:[#allocation2 + $0x44c] ss:$16 sps:$4 sm:$0xff]   ;;  %v3684_v37 = vld [vmem:[#allocation4 + $0xc4] ss:$16 sps:$4 sm:$0xff]  }
  0xb3   :  { %1513 = vmatpush1.bf16.msra.mxu0 %v3595_v40  ;;  %v3685_v40 = vld [vmem:[#allocation4 + $0xa0] ss:$16 sps:$4 sm:$0xff]  }
  0xb4   :  { %1552 = vmatpush1.bf16.msra.mxu1 %v3592_v39  ;;  %1514 = vmatprep.subr.bf16.mxu0 %v3603_v42  ;;  %v3687_v39 = vld [vmem:[#allocation4 + $0xa4] ss:$16 sps:$4 sm:$0xff]   ;;  %v3691_v42 = vld [vmem:[#allocation4 + $0x60] ss:$16 sps:$4 sm:$0xff]  }
  0xb5   :  { %1553 = vmatprep.subr.bf16.mxu1 %v3600_v41  ;;  %v3688_v41 = vld [vmem:[#allocation4 + $0x80] ss:$16 sps:$4 sm:$0xff]  }
  0xb7   :  { %1515 = vmatpush1.bf16.msra.mxu0 %v3601_v45  ;;  %v3735_v45 = vld [vmem:[#allocation4 + $0x2e4] ss:$16 sps:$4 sm:$0xff]  }
  0xb8   :  { %1554 = vmatpush1.bf16.msra.mxu1 %v3598_v43  ;;  %1516 = vmatprep.subr.bf16.mxu0 %v3609_v46  ;;  %v3733_v43 = vld [vmem:[#allocation4 + $0x2e0] ss:$16 sps:$4 sm:$0xff]   ;;  %v3741_v46 = vld [vmem:[#allocation4 + $0x2c4] ss:$16 sps:$4 sm:$0xff]  }
  0xb9   :  { %1555 = vmatprep.subr.bf16.mxu1 %v3606_v54  ;;  %v3739_v54 = vld [vmem:[#allocation4 + $0x2c0] ss:$16 sps:$4 sm:$0xff]  }
  0xbb   :  { %1517 = vmatpush1.bf16.msra.mxu0 %v3607_v12  ;;  %v3697_v12 = vld [vmem:[#allocation4 + $0x20] ss:$16 sps:$4 sm:$0xff]  }
  0xbc   :  { %1556 = vmatpush1.bf16.msra.mxu1 %v3604_v47  ;;  %1518 = vmatprep.subr.bf16.mxu0 %v3615_v49  ;;  %v3699_v47 = vld [vmem:[#allocation4 + $0x24] ss:$16 sps:$4 sm:$0xff]  }
  0xbd   :  { %1557 = vmatprep.subr.bf16.mxu1 %v3612_v48  ;;  %v3745_v48 = vld [vmem:[#allocation4 + $0x2a0] ss:$16 sps:$4 sm:$0xff]   ;;  %v3747_v49 = vld [vmem:[#allocation4 + $0x2a4] ss:$16 sps:$4 sm:$0xff]  }
  0xbf   :  { %1519 = vmatpush1.bf16.msra.mxu0 %v3613_v51  ;;  %v3700_v51 = vld [vmem:[#allocation4] ss:$16 sps:$4 sm:$0xff]  }
  0xc0   :  { %1558 = vmatpush1.bf16.msra.mxu1 %v3610_v50  ;;  %1520 = vmatprep.subr.bf16.mxu0 %v3621_v52  ;;  %v3702_v50 = vld [vmem:[#allocation4 + $0x4] ss:$16 sps:$4 sm:$0xff]  }
  0xc1   :  { %1559 = vmatprep.subr.bf16.mxu1 %v3618_v44  ;;  %v3751_v44 = vld [vmem:[#allocation4 + $0x280] ss:$16 sps:$4 sm:$0xff]   ;;  %v3753_v52 = vld [vmem:[#allocation4 + $0x284] ss:$16 sps:$4 sm:$0xff]  }
  0xc3   :  { %1521 = vmatpush1.bf16.msra.mxu0 %v3619_v55  ;;  %v3703_v55 = vld [vmem:[#allocation4 + $0x1e0] ss:$16 sps:$4 sm:$0xff]  }
  0xc4   :  { %1560 = vmatpush1.bf16.msra.mxu1 %v3616_v53  ;;  %1522 = vmatprep.subr.bf16.mxu0 %v3627_v57  ;;  %v3705_v53 = vld [vmem:[#allocation4 + $0x1e4] ss:$16 sps:$4 sm:$0xff]  }
  0xc5   :  { %1561 = vmatprep.subr.bf16.mxu1 %v3624_v56  ;;  %v3757_v56 = vld [vmem:[#allocation4 + $0x260] ss:$16 sps:$4 sm:$0xff]   ;;  %v3759_v57 = vld [vmem:[#allocation4 + $0x264] ss:$16 sps:$4 sm:$0xff]  }
  0xc7   :  { %1523 = vmatpush2.bf16.msra.mxu0 %v3625_v59  ;;  %v3706_v59 = vld [vmem:[#allocation4 + $0x1c0] ss:$16 sps:$4 sm:$0xff]  }
  0xc8   :  { %1562 = vmatpush1.bf16.msra.mxu1 %v3622_v58  ;;  %1524 = vmatprep.subr.bf16.mxu0 %v3633_v61  ;;  %v3708_v58 = vld [vmem:[#allocation4 + $0x1c4] ss:$16 sps:$4 sm:$0xff]  }
  0xc9   :  { %1563 = vmatprep.subr.bf16.mxu1 %v3630_v60  ;;  %v3763_v60 = vld [vmem:[#allocation4 + $0x240] ss:$16 sps:$4 sm:$0xff]   ;;  %v3765_v61 = vld [vmem:[#allocation4 + $0x244] ss:$16 sps:$4 sm:$0xff]  }
  0xcb   :  { %1525 = vmatpush2.bf16.msra.mxu0 %v3631_v63  ;;  %v3709_v63 = vld [vmem:[#allocation4 + $0x1a0] ss:$16 sps:$4 sm:$0xff]  }
  0xcc   :  { %1564 = vmatpush1.bf16.msra.mxu1 %v3628_v62  ;;  %1526 = vmatprep.subr.bf16.mxu0 %v3639_v1  ;;  %v3711_v62 = vld [vmem:[#allocation4 + $0x1a4] ss:$16 sps:$4 sm:$0xff]  }
  0xcd   :  { %1565 = vmatprep.subr.bf16.mxu1 %v3636_v0  ;;  %v3769_v0 = vld [vmem:[#allocation4 + $0x220] ss:$16 sps:$4 sm:$0xff]   ;;  %v3771_v1 = vld [vmem:[#allocation4 + $0x224] ss:$16 sps:$4 sm:$0xff]  }
  0xcf   :  { %1527 = vmatpush2.bf16.msra.mxu0 %v3637_v3  ;;  %v3712_v3 = vld [vmem:[#allocation4 + $0x180] ss:$16 sps:$4 sm:$0xff]  }
  0xd0   :  { %1566 = vmatpush2.bf16.msra.mxu1 %v3634_v2  ;;  %1528 = vmatprep.subr.bf16.mxu0 %v3645_v5  ;;  %v3714_v2 = vld [vmem:[#allocation4 + $0x184] ss:$16 sps:$4 sm:$0xff]  }
  0xd1   :  { %1567 = vmatprep.subr.bf16.mxu1 %v3642_v4  ;;  %v3775_v4 = vld [vmem:[#allocation4 + $0x200] ss:$16 sps:$4 sm:$0xff]   ;;  %v3777_v5 = vld [vmem:[#allocation4 + $0x204] ss:$16 sps:$4 sm:$0xff]  }
  0xd3   :  { %1529 = vmatpush2.bf16.msra.mxu0 %v3643_v7  ;;  %v3715_v7 = vld [vmem:[#allocation4 + $0x160] ss:$16 sps:$4 sm:$0xff]  }
  0xd4   :  { %1568 = vmatpush2.bf16.msra.mxu1 %v3640_v6  ;;  %1530 = vmatprep.subr.bf16.mxu0 %v3651_v9  ;;  %v3717_v6 = vld [vmem:[#allocation4 + $0x164] ss:$16 sps:$4 sm:$0xff]  }
  0xd5   :  { %1569 = vmatprep.subr.bf16.mxu1 %v3648_v8  ;;  %v3781_v8 = vld [vmem:[#allocation4 + $0x3e0] ss:$16 sps:$4 sm:$0xff]   ;;  %v3783_v9 = vld [vmem:[#allocation4 + $0x3e4] ss:$16 sps:$4 sm:$0xff]  }
  0xd7   :  { %1531 = vmatpush2.bf16.msra.mxu0 %v3649_v11  ;;  %v3718_v11 = vld [vmem:[#allocation4 + $0x140] ss:$16 sps:$4 sm:$0xff]  }
  0xd8   :  { %1570 = vmatpush2.bf16.msra.mxu1 %v3646_v10  ;;  %1532 = vmatprep.subr.bf16.mxu0 %v3657_v15  ;;  %v3720_v10 = vld [vmem:[#allocation4 + $0x144] ss:$16 sps:$4 sm:$0xff]  }
  0xd9   :  { %1571 = vmatprep.subr.bf16.mxu1 %v3654_v14  ;;  %v3787_v14 = vld [vmem:[#allocation4 + $0x3c0] ss:$16 sps:$4 sm:$0xff]   ;;  %v3789_v15 = vld [vmem:[#allocation4 + $0x3c4] ss:$16 sps:$4 sm:$0xff]  }
  0xdb   :  { %1533 = vmatpush2.bf16.msra.mxu0 %v3655_v17  ;;  %v3721_v17 = vld [vmem:[#allocation4 + $0x120] ss:$16 sps:$4 sm:$0xff]  }
  0xdc   :  { %1572 = vmatpush2.bf16.msra.mxu1 %v3652_v16  ;;  %1534 = vmatprep.subr.bf16.mxu0 %v3663_v19  ;;  %v3723_v16 = vld [vmem:[#allocation4 + $0x124] ss:$16 sps:$4 sm:$0xff]  }
  0xdd   :  { %1573 = vmatprep.subr.bf16.mxu1 %v3660_v18  ;;  %v3793_v18 = vld [vmem:[#allocation4 + $0x3a0] ss:$16 sps:$4 sm:$0xff]   ;;  %v3795_v19 = vld [vmem:[#allocation4 + $0x3a4] ss:$16 sps:$4 sm:$0xff]  }
  0xdf   :  { %1535 = vmatpush2.bf16.msra.mxu0 %v3661_v22  ;;  %v3724_v22 = vld [vmem:[#allocation4 + $0x100] ss:$16 sps:$4 sm:$0xff]  }
  0xe0   :  { %1574 = vmatpush2.bf16.msra.mxu1 %v3658_v20  ;;  %1536 = vmatprep.subr.bf16.mxu0 %v3669_v25  ;;  %v3726_v20 = vld [vmem:[#allocation4 + $0x104] ss:$16 sps:$4 sm:$0xff]   ;;  %v3729_v25 = vld [vmem:[#allocation4 + $0xec] ss:$16 sps:$4 sm:$0xff]  }
  0xe1   :  { %1575 = vmatprep.subr.bf16.mxu1 %v3666_v24  ;;  %v3801_v24 = vld [vmem:[#allocation4 + $0x384] ss:$16 sps:$4 sm:$0xff]  }
  0xe3   :  { %1537 = vmatpush2.bf16.msra.mxu0 %v3667_v28  ;;  %v3807_v28 = vld [vmem:[#allocation4 + $0x364] ss:$16 sps:$4 sm:$0xff]  }
  0xe4   :  { %1576 = vmatpush2.bf16.msra.mxu1 %v3664_v27  ;;  %1606 = vmatprep.subr.bf16.mxu0 %v3675_v30  ;;  %v3799_v27 = vld [vmem:[#allocation4 + $0x380] ss:$16 sps:$4 sm:$0xff]   ;;  %v3813_v30 = vld [vmem:[#allocation4 + $0x344] ss:$16 sps:$4 sm:$0xff]  }
  0xe5   :  { %1577 = vmatprep.subr.bf16.mxu1 %v3672_v29  ;;  %v3805_v29 = vld [vmem:[#allocation4 + $0x360] ss:$16 sps:$4 sm:$0xff]  }
  0xe6   :  { %1539 = vmatmul.mubr.bf16.vlgmr.msra.gmra.mxu0 %v4056_v13  ;;  %v3690_v13 = vld [vmem:[#allocation4 + $0x84] ss:$16 sps:$4 sm:$0xff]  }
  0xe7   :  { %1607 = vmatpush1.bf16.msra.mxu0 %v3673_v32  ;;  %1624 = vmatprep.mubr.bf16.mxu0 %v3974_v21  ;;  %v3693_v21 = vld [vmem:[#allocation4 + $0x64] ss:$16 sps:$4 sm:$0xff]  }
  0xe8   :  { %1578 = vmatpush2.bf16.msra.mxu1 %v3670_v31  ;;  %2437 = vmatprep.subr.bf16.mxu0 %v3681_v34  ;;  %v3811_v31 = vld [vmem:[#allocation4 + $0x340] ss:$16 sps:$4 sm:$0xff]   ;;  %v3819_v32 = vld [vmem:[#allocation4 + $0x324] ss:$16 sps:$4 sm:$0xff]  }
  0xe9   :  { %1579 = vmatprep.subr.bf16.mxu1 %v3678_v33  ;;  %v3817_v33 = vld [vmem:[#allocation4 + $0x320] ss:$16 sps:$4 sm:$0xff]   ;;  %v3822_v34 = vld [vmem:[#allocation4 + $0x304] ss:$16 sps:$4 sm:$0xff]  }
  0xec   :  { %1580 = vmatpush2.bf16.msra.mxu1 %v3676_v35  ;;  %v3820_v35 = vld [vmem:[#allocation4 + $0x300] ss:$16 sps:$4 sm:$0xff]  }
  0xed   :  { %2480 = vmatprep.subr.bf16.mxu1 %v3735_v45  ;;  %v4105_v45 = vld [vmem:[%s4151_s2] sm:$0xf] }
  0xee   :  { %3171 = vmatmul.mubr.msk.bf16.vlgmr.msra.gmra.mxu0 %vm1287_vm0, %v4067_v23  ;;  %v3694_v23 = vld [vmem:[#allocation4 + $0x40] ss:$16 sps:$4 sm:$0xff]  }
  0xef   :  { %1582 = vmatmul.mubr.bf16.vlgmr.msra.gmra.mxu1 %v4087_v26  ;;  %2438 = vmatpush1.bf16.msra.mxu0 %v3679_v36  ;;  %v3696_v26 = vld [vmem:[#allocation4 + $0x44] ss:$16 sps:$4 sm:$0xff]   ;;  %v3825_v36 = vld [vmem:[#allocation4 + $0x2ec] ss:$16 sps:$4 sm:$0xff]  }
  0xf0   :  { %2439 = vmatprep.subr.bf16.mxu0 %v3684_v37  ;;  %2481 = vmatpush1.bf16.msra.mxu1 %v3733_v43 }
  0xf1   :  { %2482 = vmatprep.subr.bf16.mxu1 %v3741_v46 }
  0xf3   :  { %2440 = vmatpush1.bf16.msra.mxu0 %v3682_v38  ;;  %v287_v38 = vlaneseq }
  0xf4   :  { %2441 = vmatprep.subr.bf16.mxu0 %v3687_v39  ;;  %2483 = vmatpush1.bf16.msra.mxu1 %v3739_v54 }
  0xf5   :  { %2484 = vmatprep.subr.bf16.mxu1 %v3747_v49 }
  0xf7   :  { %2442 = vmatpush1.bf16.msra.mxu0 %v3685_v40  ;;  %v4098_v40 = vshrl.u32 %v287_v38, 7  ;;  %v3784_v38 = vld [vmem:[#allocation4 + $0x1a8] ss:$16 sps:$4 sm:$0xff]  }
  0xf8   :  { %2443 = vmatprep.subr.bf16.mxu0 %v3690_v13  ;;  %2485 = vmatpush1.bf16.msra.mxu1 %v3745_v48 }
  0xf9   :  { %2486 = vmatprep.subr.bf16.mxu1 %v3753_v52 }
  0xfb   :  { %2444 = vmatpush1.bf16.msra.mxu0 %v3688_v41 }
  0xfc   :  { %2445 = vmatprep.subr.bf16.mxu0 %v3693_v21  ;;  %2487 = vmatpush1.bf16.msra.mxu1 %v3751_v44  ;;  %v293_v21 = vsub.s32 1, %v4098_v40 }
  0xfd   :  { %2488 = vmatprep.subr.bf16.mxu1 %v3759_v57 }
  0xff   :  { %2446 = vmatpush1.bf16.msra.mxu0 %v3691_v42  ;;  %v289_v42 = vsub.s32 0, %v4098_v40 }
 0x100   :  { %2447 = vmatprep.subr.bf16.mxu0 %v3696_v26  ;;  %2489 = vmatpush1.bf16.msra.mxu1 %v3757_v56 }
 0x101   :  { %2490 = vmatprep.subr.bf16.mxu1 %v3765_v61  ;;  %v290_v54 = vrot.slane %v4105_v45, %v289_v42 }
 0x103   :  { %2448 = vmatpush1.bf16.msra.mxu0 %v3694_v23  ;;  %v294_v23 = vrot.slane %v4105_v45, %v293_v21 }
 0x104   :  { %2449 = vmatprep.subr.bf16.mxu0 %v3699_v47  ;;  %2491 = vmatpush1.bf16.msra.mxu1 %v3763_v60 }
 0x105   :  { %2492 = vmatprep.subr.bf16.mxu1 %v3771_v1 }
 0x107   :  { %2450 = vmatpush1.bf16.msra.mxu0 %v3697_v12 }
 0x108   :  { %2451 = vmatprep.subr.bf16.mxu0 %v3702_v50  ;;  %2493 = vmatpush1.bf16.msra.mxu1 %v3769_v0 }
 0x109   :  { %2494 = vmatprep.subr.bf16.mxu1 %v3777_v5 }
 0x10b   :  { %2452 = vmatpush1.bf16.msra.mxu0 %v3700_v51 }
 0x10c   :  { %2453 = vmatprep.subr.bf16.mxu0 %v3705_v53  ;;  %2495 = vmatpush1.bf16.msra.mxu1 %v3775_v4 }
 0x10d   :  { %2496 = vmatprep.subr.bf16.mxu1 %v3783_v9 }
 0x10f   :  { %2454 = vmatpush2.bf16.msra.mxu0 %v3703_v55 }
 0x110   :  { %2455 = vmatprep.subr.bf16.mxu0 %v3708_v58  ;;  %2497 = vmatpush2.bf16.msra.mxu1 %v3781_v8 }
 0x111   :  { %2498 = vmatprep.subr.bf16.mxu1 %v3789_v15 }
 0x113   :  { %2456 = vmatpush2.bf16.msra.mxu0 %v3706_v59 }
 0x114   :  { %2457 = vmatprep.subr.bf16.mxu0 %v3711_v62  ;;  %2499 = vmatpush2.bf16.msra.mxu1 %v3787_v14  ;;  %v3727_v14 = vld [vmem:[#allocation4 + $0xe8] ss:$16 sps:$4 sm:$0xff]  }
 0x115   :  { %2500 = vmatprep.subr.bf16.mxu1 %v3795_v19  ;;  %v3736_v19 = vld [vmem:[#allocation4 + $0xa8] ss:$16 sps:$4 sm:$0xff]  }
 0x117   :  { %2458 = vmatpush2.bf16.msra.mxu0 %v3709_v63 }
 0x118   :  { %2459 = vmatprep.subr.bf16.mxu0 %v3714_v2  ;;  %2501 = vmatpush2.bf16.msra.mxu1 %v3793_v18  ;;  %v3738_v18 = vld [vmem:[#allocation4 + $0xac] ss:$16 sps:$4 sm:$0xff]  }
 0x119   :  { %2502 = vmatprep.subr.bf16.mxu1 %v3801_v24  ;;  %v3750_v24 = vld [vmem:[#allocation4 + $0x6c] ss:$16 sps:$4 sm:$0xff]  }
 0x11b   :  { %2460 = vmatpush2.bf16.msra.mxu0 %v3712_v3 }
 0x11c   :  { %2461 = vmatprep.subr.bf16.mxu0 %v3717_v6  ;;  %2503 = vmatpush2.bf16.msra.mxu1 %v3799_v27  ;;  %v3756_v27 = vld [vmem:[#allocation4 + $0x4c] ss:$16 sps:$4 sm:$0xff]  }
 0x11d   :  { %2504 = vmatprep.subr.bf16.mxu1 %v3807_v28  ;;  %v3754_v28 = vld [vmem:[#allocation4 + $0x48] ss:$16 sps:$4 sm:$0xff]  }
 0x11f   :  { %2462 = vmatpush2.bf16.msra.mxu0 %v3715_v7 }
 0x120   :  { %2463 = vmatprep.subr.bf16.mxu0 %v3720_v10  ;;  %2505 = vmatpush2.bf16.msra.mxu1 %v3805_v29  ;;  %v3762_v29 = vld [vmem:[#allocation4 + $0x2c] ss:$16 sps:$4 sm:$0xff]  }
 0x121   :  { %2506 = vmatprep.subr.bf16.mxu1 %v3813_v30  ;;  %v3760_v30 = vld [vmem:[#allocation4 + $0x28] ss:$16 sps:$4 sm:$0xff]  }
 0x123   :  { %2464 = vmatpush2.bf16.msra.mxu0 %v3718_v11 }
 0x124   :  { %2465 = vmatprep.subr.bf16.mxu0 %v3723_v16  ;;  %2507 = vmatpush2.bf16.msra.mxu1 %v3811_v31  ;;  %v3732_v16 = vld [vmem:[#allocation4 + $0xcc] ss:$16 sps:$4 sm:$0xff]  }
 0x125   :  { %2508 = vmatprep.subr.bf16.mxu1 %v3819_v32  ;;  %v3768_v31 = vld [vmem:[#allocation4 + $0xc] ss:$16 sps:$4 sm:$0xff]   ;;  %v3766_v32 = vld [vmem:[#allocation4 + $0x8] ss:$16 sps:$4 sm:$0xff]  }
 0x126   :  { %v1325_v13 = vpop.f32.mrf.mxu0 }
 0x127   :  { %2466 = vmatpush2.bf16.msra.mxu0 %v3721_v17  ;;  %v1368_v37 = vpop.f32.mrf.mxu1  ;;  %v1326_v48 = vadd.f32 %v1325_v13, %v290_v54  ;;  %v3730_v17 = vld [vmem:[#allocation4 + $0xc8] ss:$16 sps:$4 sm:$0xff]  }
 0x128   :  { %2467 = vmatprep.subr.bf16.mxu0 %v3726_v20  ;;  %2509 = vmatpush2.bf16.msra.mxu1 %v3817_v33  ;;  %v1327_v43 = vpop.f32.mrf.mxu0  ;;  %v3744_v20 = vld [vmem:[#allocation4 + $0x8c] ss:$16 sps:$4 sm:$0xff]   ;;  %v3790_v13 = vld [vmem:[#allocation4 + $0x188] ss:$16 sps:$4 sm:$0xff]  }
 0x129   :  { %2510 = vmatprep.subr.bf16.mxu1 %v3822_v34  ;;  %v1370_v39 = vpop.f32.mrf.mxu1  ;;  %v1328_v12 = vadd.f32 %v1327_v43, %v294_v23  ;;  %v1369_v55 = vadd.f32 %v1368_v37, %v1326_v48  ;;  %v3774_v33 = vld [vmem:[#allocation4 + $0x1ec] ss:$16 sps:$4 sm:$0xff]   ;;  %v3772_v34 = vld [vmem:[#allocation4 + $0x1e8] ss:$16 sps:$4 sm:$0xff]  }
 0x12a   :  { %v1329_v46 = vpop.f32.mrf.mxu0  ;;  %v3786_v37 = vld [vmem:[#allocation4 + $0x1ac] ss:$16 sps:$4 sm:$0xff]   ;;  %v3802_v48 = vld [vmem:[#allocation4 + $0x148] ss:$16 sps:$4 sm:$0xff]  }
 0x12b   :  { %2468 = vmatpush2.bf16.msra.mxu0 %v3724_v22  ;;  %v1372_v41 = vpop.f32.mrf.mxu1  ;;  %v1330_v50 = vadd.f32 %v1329_v46, %v290_v54  ;;  %v1371_v52 = vadd.f32 %v1370_v39, %v1328_v12  ;;  %v3742_v22 = vld [vmem:[#allocation4 + $0x88] ss:$16 sps:$4 sm:$0xff]   ;;  %v3792_v39 = vld [vmem:[#allocation4 + $0x18c] ss:$16 sps:$4 sm:$0xff]   ;;  %v301_v46 = vsub.s32 3, %v4098_v40 }
 0x12c   :  { %2523 = vmatprep.subr.bf16.mxu0 %v3729_v25  ;;  %2511 = vmatpush2.bf16.msra.mxu1 %v3820_v35  ;;  %v1331_v49 = vpop.f32.mrf.mxu0  ;;  %v3748_v25 = vld [vmem:[#allocation4 + $0x68] ss:$16 sps:$4 sm:$0xff]   ;;  %v3780_v35 = vld [vmem:[#allocation4 + $0x1cc] ss:$16 sps:$4 sm:$0xff]  }
 0x12d   :  { %2566 = vmatprep.subr.bf16.mxu1 %v3825_v36  ;;  %v1374_v26 = vpop.f32.mrf.mxu1  ;;  %v1332_v53 = vadd.f32 %v1331_v49, %v294_v23  ;;  %v1373_v57 = vadd.f32 %v1372_v41, %v1330_v50  ;;  %v3778_v36 = vld [vmem:[#allocation4 + $0x1c8] ss:$16 sps:$4 sm:$0xff]   ;;  %v3798_v43 = vld [vmem:[#allocation4 + $0x16c] ss:$16 sps:$4 sm:$0xff]  }
 0x12e   :  { %v3804_v54 = vld [vmem:[#allocation4 + $0x14c] ss:$16 sps:$4 sm:$0xff]  }
 0x12f   :  { %v1454_v47 = vpop.f32.mrf.mxu1  ;;  %v1375_v62 = vadd.f32 %v1374_v26, %v1332_v53  ;;  %v3796_v26 = vld [vmem:[#allocation4 + $0x168] ss:$16 sps:$4 sm:$0xff]  }
 0x131   :  { %v1456_v51 = vpop.f32.mrf.mxu1 }
 0x133   :  { %v1458_v59 = vpop.f32.mrf.mxu1 }
 0x135   :  { %v1460_v4 = vpop.f32.mrf.mxu1 }
 0x166   :  { %v1411_v44 = vpop.f32.mrf.mxu0 }
 0x167   :  { %v1412_v60 = vadd.f32 %v1411_v44, %v1369_v55  ;;  %v302_v44 = vrot.slane %v4105_v45, %v301_v46  ;;  %v3808_v55 = vld [vmem:[#allocation4 + $0x128] ss:$16 sps:$4 sm:$0xff]  }
 0x168   :  { %v1413_v56 = vpop.f32.mrf.mxu0 }
 0x169   :  { %v1414_v58 = vadd.f32 %v1413_v56, %v1371_v52  ;;  %v1455_v5 = vadd.f32 %v1454_v47, %v1412_v60  ;;  %v297_v47 = vsub.s32 2, %v4098_v40 }
 0x16a   :  { %v1415_v61 = vpop.f32.mrf.mxu0 }
 0x16b   :  { %v1416_v63 = vadd.f32 %v1415_v61, %v1373_v57  ;;  %v1457_v1 = vadd.f32 %v1456_v51, %v1414_v58  ;;  %v1635_v10 = vmax.f32 %v1455_v5, 0.0  ;;  %v3810_v51 = vld [vmem:[#allocation4 + $0x12c] ss:$16 sps:$4 sm:$0xff]   ;;  %v298_v52 = vrot.slane %v4105_v45, %v297_v47 }
 0x16c   :  { %v1417_v0 = vpop.f32.mrf.mxu0  ;;  %v3816_v58 = vld [vmem:[#allocation4 + $0x10c] ss:$16 sps:$4 sm:$0xff]  }
 0x16d   :  { %v1459_v2 = vadd.f32 %v1458_v59, %v1416_v63  ;;  %v1418_v3 = vadd.f32 %v1417_v0, %v1375_v62  ;;  %v1636_v8 = vmax.f32 %v1457_v1, 0.0  ;;  %v3814_v1 = vld [vmem:[#allocation4 + $0x108] ss:$16 sps:$4 sm:$0xff]  }
 0x16f   :  { %v1461_v6 = vadd.f32 %v1460_v4, %v1418_v3  ;;  %v1639_v7 = vmax.f32 %v1459_v2, 0.0  ;;  %v1497_v41 = vpop.f32.mrf.mxu1 }
 0x170   :  { %v1498_v60 = vadd.f32 %v1497_v41, %v298_v52  ;;  %v3876_v41 = vld [vmem:[#allocation6 + $0x28] sm:$0xff]  }
 0x171   :  { %v1640_v9 = vmax.f32 %v1461_v6, 0.0  ;;  %v4113_v15 = vpack.c.bf16 %v1639_v7, %v1635_v10  ;;  %v1499_v23 = vpop.f32.mrf.mxu1 }
 0x172   :  { %v1500_v59 = vadd.f32 %v1499_v23, %v302_v44  ;;  %v3835_v23 = vld [vmem:[#allocation4 + $0x268] ss:$16 sps:$4 sm:$0xff]  }
 0x173   :  { %v1644_v11 = vpack.c.bf16 %v1640_v9, %v1636_v8  ;;  %v1501_v49 = vpop.f32.mrf.mxu1 }
 0x174   :  { %v1502_v63 = vadd.f32 %v1501_v49, %v298_v52  ;;  %v3841_v49 = vld [vmem:[#allocation4 + $0x228] ss:$16 sps:$4 sm:$0xff]  }
 0x175   :  { %2469 = vmatprep.mubr.bf16.mxu0 %v1644_v11  ;;  %v1503_v56 = vpop.f32.mrf.mxu1  ;;  %v3847_v52 = vld [vmem:[#allocation4 + $0x3e8] ss:$16 sps:$4 sm:$0xff]  }
 0x176   :  { %2470 = vmatmul.mubr.bf16.vlgmr.msra.gmra.mxu0 %v4113_v15  ;;  %v1504_v45 = vadd.f32 %v1503_v56, %v302_v44  ;;  %v3849_v44 = vld [vmem:[#allocation4 + $0x3ec] ss:$16 sps:$4 sm:$0xff]  }
 0x177   :  { %2524 = vmatpush1.bf16.msra.mxu0 %v3727_v14  ;;  %2555 = vmatprep.mubr.bf16.mxu0 %v1644_v11  ;;  %v3855_v56 = vld [vmem:[#allocation4 + $0x3ac] ss:$16 sps:$4 sm:$0xff]  }
 0x178   :  { %2525 = vmatprep.subr.bf16.mxu0 %v3732_v16 }
 0x17b   :  { %2526 = vmatpush1.bf16.msra.mxu0 %v3730_v17 }
 0x17c   :  { %2527 = vmatprep.subr.bf16.mxu0 %v3738_v18 }
 0x17f   :  { %2528 = vmatpush1.bf16.msra.mxu0 %v3736_v19 }
 0x180   :  { %2529 = vmatprep.subr.bf16.mxu0 %v3744_v20 }
 0x183   :  { %2530 = vmatpush1.bf16.msra.mxu0 %v3742_v22 }
 0x184   :  { %2531 = vmatprep.subr.bf16.mxu0 %v3750_v24 }
 0x187   :  { %2532 = vmatpush1.bf16.msra.mxu0 %v3748_v25 }
 0x188   :  { %2533 = vmatprep.subr.bf16.mxu0 %v3756_v27 }
 0x18b   :  { %2534 = vmatpush1.bf16.msra.mxu0 %v3754_v28 }
 0x18c   :  { %2535 = vmatprep.subr.bf16.mxu0 %v3762_v29 }
 0x18f   :  { %2536 = vmatpush1.bf16.msra.mxu0 %v3760_v30  ;;  %v3823_v30 = vld [vmem:[#allocation4 + $0x2e8] ss:$16 sps:$4 sm:$0xff]  }
 0x190   :  { %2537 = vmatprep.subr.bf16.mxu0 %v3768_v31 }
 0x193   :  { %2538 = vmatpush1.bf16.msra.mxu0 %v3766_v32  ;;  %v3828_v32 = vld [vmem:[#allocation4 + $0x2cc] ss:$16 sps:$4 sm:$0xff]  }
 0x194   :  { %2539 = vmatprep.subr.bf16.mxu0 %v3774_v33  ;;  %v3871_v33 = vld [vmem:[#allocation6 + $0x78] sm:$0xff]  }
 0x197   :  { %2540 = vmatpush2.bf16.msra.mxu0 %v3772_v34  ;;  %v3872_v34 = vld [vmem:[#allocation6 + $0x38] sm:$0xff]  }
 0x198   :  { %2541 = vmatprep.subr.bf16.mxu0 %v3780_v35  ;;  %v3873_v35 = vld [vmem:[#allocation6 + $0x70] sm:$0xff]  }
 0x19b   :  { %2542 = vmatpush2.bf16.msra.mxu0 %v3778_v36  ;;  %v3826_v36 = vld [vmem:[#allocation4 + $0x2c8] ss:$16 sps:$4 sm:$0xff]  }
 0x19c   :  { %2543 = vmatprep.subr.bf16.mxu0 %v3786_v37  ;;  %v3874_v37 = vld [vmem:[#allocation6 + $0x30] sm:$0xff]  }
 0x19f   :  { %2544 = vmatpush2.bf16.msra.mxu0 %v3784_v38  ;;  %v3875_v38 = vld [vmem:[#allocation6 + $0x68] sm:$0xff]  }
 0x1a0   :  { %2545 = vmatprep.subr.bf16.mxu0 %v3792_v39  ;;  %v3829_v39 = vld [vmem:[#allocation4 + $0x2a8] ss:$16 sps:$4 sm:$0xff]  }
 0x1a3   :  { %2546 = vmatpush2.bf16.msra.mxu0 %v3790_v13  ;;  %v3834_v13 = vld [vmem:[#allocation4 + $0x28c] ss:$16 sps:$4 sm:$0xff]  }
 0x1a4   :  { %2547 = vmatprep.subr.bf16.mxu0 %v3798_v43  ;;  %v3832_v43 = vld [vmem:[#allocation4 + $0x288] ss:$16 sps:$4 sm:$0xff]  }
 0x1a6   :  { %v1540_v12 = vpop.f32.mrf.mxu0 }
 0x1a7   :  { %2548 = vmatpush2.bf16.msra.mxu0 %v3796_v26  ;;  %v1541_v2 = vadd.f32 %v1540_v12, %v1498_v60  ;;  %v3837_v26 = vld [vmem:[#allocation4 + $0x26c] ss:$16 sps:$4 sm:$0xff]   ;;  %v3838_v12 = vld [vmem:[#allocation4 + $0x248] ss:$16 sps:$4 sm:$0xff]  }
 0x1a8   :  { %v1542_v50 = vpop.f32.mrf.mxu0  ;;  %2549 = vmatprep.subr.bf16.mxu0 %v3804_v54  ;;  %v3840_v54 = vld [vmem:[#allocation4 + $0x24c] ss:$16 sps:$4 sm:$0xff]  }
 0x1a9   :  { %v1543_v0 = vadd.f32 %v1542_v50, %v1500_v59  ;;  %v3846_v50 = vld [vmem:[#allocation4 + $0x20c] ss:$16 sps:$4 sm:$0xff]   ;;  %v3856_v59 = vld [vmem:[#allocation4 + $0x388] ss:$16 sps:$4 sm:$0xff]  }
 0x1aa   :  { %v1544_v53 = vpop.f32.mrf.mxu0  ;;  %v3861_v60 = vld [vmem:[#allocation4 + $0x36c] ss:$16 sps:$4 sm:$0xff]  }
 0x1ab   :  { %2550 = vmatpush2.bf16.msra.mxu0 %v3802_v48  ;;  %v1545_v5 = vadd.f32 %v1544_v53, %v1502_v63  ;;  %v3843_v48 = vld [vmem:[#allocation4 + $0x22c] ss:$16 sps:$4 sm:$0xff]   ;;  %v3862_v63 = vld [vmem:[#allocation4 + $0x348] ss:$16 sps:$4 sm:$0xff]  }
 0x1ac   :  { %v1546_v57 = vpop.f32.mrf.mxu0  ;;  %2551 = vmatprep.subr.bf16.mxu0 %v3810_v51  ;;  %v3844_v51 = vld [vmem:[#allocation4 + $0x208] ss:$16 sps:$4 sm:$0xff]   ;;  %v3852_v53 = vld [vmem:[#allocation4 + $0x3cc] ss:$16 sps:$4 sm:$0xff]  }
 0x1ad   :  { %v1547_v10 = vadd.f32 %v1546_v57, %v1504_v45  ;;  %v3853_v57 = vld [vmem:[#allocation4 + $0x3a8] ss:$16 sps:$4 sm:$0xff]   ;;  %v3878_v45 = vld [vmem:[#allocation6 + $0x20] sm:$0xff]  }
 0x1ae   :  { %v1626_v62 = vpop.f32.mrf.mxu0 }
 0x1af   :  { %v1583_v61 = vpop.f32.mrf.mxu1  ;;  %2552 = vmatpush2.bf16.msra.mxu0 %v3808_v55  ;;  %v3850_v55 = vld [vmem:[#allocation4 + $0x3c8] ss:$16 sps:$4 sm:$0xff]  }
 0x1b0   :  { %v1628_v4 = vpop.f32.mrf.mxu0  ;;  %2553 = vmatprep.subr.bf16.mxu0 %v3816_v58  ;;  %v1584_v7 = vadd.f32 %v1583_v61, %v1541_v2  ;;  %v3858_v58 = vld [vmem:[#allocation4 + $0x38c] ss:$16 sps:$4 sm:$0xff]   ;;  %v3859_v61 = vld [vmem:[#allocation4 + $0x368] ss:$16 sps:$4 sm:$0xff]  }
 0x1b1   :  { %v1585_v3 = vpop.f32.mrf.mxu1  ;;  %v3870_v2 = vld [vmem:[#allocation4 + $0x30c] ss:$16 sps:$4 sm:$0xff]  }
 0x1b2   :  { %v1586_v6 = vadd.f32 %v1585_v3, %v1543_v0  ;;  %v1630_v9 = vpop.f32.mrf.mxu0  ;;  %v1627_v20 = vadd.f32 %v1626_v62, %v1584_v7  ;;  %v3864_v62 = vld [vmem:[#allocation4 + $0x34c] ss:$16 sps:$4 sm:$0xff]   ;;  %v3868_v3 = vld [vmem:[#allocation4 + $0x308] ss:$16 sps:$4 sm:$0xff]   ;;  %v3881_v7 = vld [vmem:[#allocation6 + $0x50] sm:$0xff]  }
 0x1b3   :  { %v1587_v8 = vpop.f32.mrf.mxu1  ;;  %2554 = vmatpush2.bf16.msra.mxu0 %v3814_v1  ;;  %v3867_v0 = vld [vmem:[#allocation4 + $0x32c] ss:$16 sps:$4 sm:$0xff]   ;;  %v3865_v1 = vld [vmem:[#allocation4 + $0x328] ss:$16 sps:$4 sm:$0xff]  }
 0x1b4   :  { %v1588_v11 = vadd.f32 %v1587_v8, %v1545_v5  ;;  %v1632_v16 = vpop.f32.mrf.mxu0  ;;  %v1629_v17 = vadd.f32 %v1628_v4, %v1586_v6  ;;  %v1637_v28 = vmax.f32 %v1627_v20, 0.0  ;;  %3333 = vmatprep.subr.bf16.mxu0 %v3871_v33  ;;  %v3877_v4 = vld [vmem:[#allocation6 + $0x60] sm:$0xff]   ;;  %v3879_v5 = vld [vmem:[#allocation6 + $0x58] sm:$0xff]   ;;  %v3882_v8 = vld [vmem:[#allocation6 + $0x10] sm:$0xff]  }
 0x1b5   :  { %v1589_v14 = vpop.f32.mrf.mxu1  ;;  %v3880_v6 = vld [vmem:[#allocation6 + $0x18] sm:$0xff]   ;;  %v3891_v20 = vld [vmem:[#allocation6 + $0xe8] sm:$0xff]   ;;  %v3901_v33 = vld [vmem:[#allocation6 + $0xc0] sm:$0xff]  }
 0x1b6   :  { %v1631_v18 = vadd.f32 %v1630_v9, %v1588_v11  ;;  %v1590_v19 = vadd.f32 %v1589_v14, %v1547_v10  ;;  %2556 = vmatmul.mubr.bf16.vlgmr.msra.gmra.mxu0 %v4113_v15  ;;  %v1638_v25 = vmax.f32 %v1629_v17, 0.0  ;;  %v3831_v15 = vld [vmem:[#allocation4 + $0x2ac] ss:$16 sps:$4 sm:$0xff]   ;;  %v3885_v11 = vld [vmem:[#allocation6 + $0x40] sm:$0xff]  }
 0x1b7   :  { %3334 = vmatpush3.bf16.msra.mxu0 %v3872_v34  ;;  %v3883_v9 = vld [vmem:[#allocation6 + $0x48] sm:$0xff]   ;;  %v3886_v14 = vld [vmem:[#allocation6] sm:$0xff]   ;;  %v3888_v17 = vld [vmem:[#allocation6 + $0xb8] sm:$0xff]  }
 0x1b8   :  { %v1633_v22 = vadd.f32 %v1632_v16, %v1590_v19  ;;  %v1641_v24 = vmax.f32 %v1631_v18, 0.0  ;;  %3335 = vmatprep.subr.bf16.mxu0 %v3873_v35  ;;  %v3884_v10 = vld [vmem:[#allocation6 + $0x8] sm:$0xff]   ;;  %v3887_v16 = vld [vmem:[#allocation6 + $0xf8] sm:$0xff]   ;;  %v3889_v18 = vld [vmem:[#allocation6 + $0xf0] sm:$0xff]  }
 0x1b9   :  { %v3890_v19 = vld [vmem:[#allocation6 + $0xb0] sm:$0xff]   ;;  %v3902_v34 = vld [vmem:[#allocation6 + $0x80] sm:$0xff]  }
 0x1ba   :  { %v1642_v27 = vmax.f32 %v1633_v22, 0.0  ;;  %v4125_v31 = vpack.c.bf16 %v1641_v24, %v1637_v28  ;;  %v3892_v22 = vld [vmem:[#allocation6 + $0xa8] sm:$0xff]   ;;  %v3893_v24 = vld [vmem:[#allocation6 + $0xe0] sm:$0xff]   ;;  %v3896_v28 = vld [vmem:[#allocation6 + $0x98] sm:$0xff]  }
 0x1bb   :  { %3336 = vmatpush3.bf16.msra.mxu0 %v3874_v37 }
 0x1bc   :  { %v1646_v29 = vpack.c.bf16 %v1642_v27, %v1638_v25  ;;  %3337 = vmatprep.subr.bf16.mxu0 %v3875_v38  ;;  %v3894_v25 = vld [vmem:[#allocation6 + $0xa0] sm:$0xff]   ;;  %v3895_v27 = vld [vmem:[#allocation6 + $0xd8] sm:$0xff]  }
 0x1be   :  { %2512 = vmatprep.mubr.bf16.mxu1 %v1646_v29 }
 0x1bf   :  { %2513 = vmatmul.mubr.bf16.vlgmr.msra.gmra.mxu1 %v4125_v31  ;;  %3338 = vmatpush3.bf16.msra.mxu0 %v3876_v41 }
 0x1c0   :  { %2567 = vmatpush1.bf16.msra.mxu1 %v3823_v30  ;;  %2598 = vmatprep.mubr.bf16.mxu1 %v1646_v29  ;;  %v3897_v29 = vld [vmem:[#allocation6 + $0xd0] sm:$0xff]  }
 0x1c1   :  { %2568 = vmatprep.subr.bf16.mxu1 %v3828_v32  ;;  %3339 = vmatprep.subr.bf16.mxu0 %v3877_v4  ;;  %v3898_v30 = vld [vmem:[#allocation6 + $0x90] sm:$0xff]   ;;  %v3900_v32 = vld [vmem:[#allocation6 + $0x88] sm:$0xff]  }
 0x1c3   :  { %3340 = vmatpush3.bf16.msra.mxu0 %v3878_v45 }
 0x1c4   :  { %2569 = vmatpush1.bf16.msra.mxu1 %v3826_v36  ;;  %3341 = vmatprep.subr.bf16.mxu0 %v3879_v5 }
 0x1c5   :  { %2570 = vmatprep.subr.bf16.mxu1 %v3831_v15  ;;  %v1775_v15 = vld [vmem:[%s4153_s4] sm:$0xf] }
 0x1c6   :  { %v1784_v38 = vrot.slane %v1775_v15, %v293_v21 }
 0x1c7   :  { %3342 = vmatpush3.bf16.msra.mxu0 %v3880_v6 }
 0x1c8   :  { %2571 = vmatpush1.bf16.msra.mxu1 %v3829_v39  ;;  %3343 = vmatprep.subr.bf16.mxu0 %v3881_v7  ;;  %v1780_v39 = vrot.slane %v1775_v15, %v289_v42 }
 0x1c9   :  { %2572 = vmatprep.subr.bf16.mxu1 %v3834_v13 }
 0x1cb   :  { %3344 = vmatpush3.bf16.msra.mxu0 %v3882_v8 }
 0x1cc   :  { %2573 = vmatpush1.bf16.msra.mxu1 %v3832_v43  ;;  %3345 = vmatprep.subr.bf16.mxu0 %v3883_v9 }
 0x1cd   :  { %2574 = vmatprep.subr.bf16.mxu1 %v3837_v26 }
 0x1cf   :  { %3346 = vmatpush3.bf16.msra.mxu0 %v3884_v10 }
 0x1d0   :  { %2575 = vmatpush1.bf16.msra.mxu1 %v3835_v23  ;;  %3347 = vmatprep.subr.bf16.mxu0 %v3885_v11 }
 0x1d1   :  { %2576 = vmatprep.subr.bf16.mxu1 %v3840_v54 }
 0x1d3   :  { %3348 = vmatpush3.bf16.msra.mxu0 %v3886_v14 }
 0x1d4   :  { %2577 = vmatpush1.bf16.msra.mxu1 %v3838_v12 }
 0x1d5   :  { %2578 = vmatprep.subr.bf16.mxu1 %v3843_v48 }
 0x1d8   :  { %2579 = vmatpush1.bf16.msra.mxu1 %v3841_v49 }
 0x1d9   :  { %2580 = vmatprep.subr.bf16.mxu1 %v3846_v50 }
 0x1dc   :  { %2581 = vmatpush1.bf16.msra.mxu1 %v3844_v51 }
 0x1dd   :  { %2582 = vmatprep.subr.bf16.mxu1 %v3849_v44 }
 0x1e0   :  { %2583 = vmatpush2.bf16.msra.mxu1 %v3847_v52 }
 0x1e1   :  { %2584 = vmatprep.subr.bf16.mxu1 %v3852_v53 }
 0x1e4   :  { %2585 = vmatpush2.bf16.msra.mxu1 %v3850_v55 }
 0x1e5   :  { %2586 = vmatprep.subr.bf16.mxu1 %v3855_v56 }
 0x1e8   :  { %2587 = vmatpush2.bf16.msra.mxu1 %v3853_v57 }
 0x1e9   :  { %2588 = vmatprep.subr.bf16.mxu1 %v3858_v58 }
 0x1ec   :  { %2589 = vmatpush2.bf16.msra.mxu1 %v3856_v59 }
 0x1ed   :  { %2590 = vmatprep.subr.bf16.mxu1 %v3861_v60 }
 0x1f0   :  { %2591 = vmatpush2.bf16.msra.mxu1 %v3859_v61  ;;  %v1792_v61 = vrot.slane %v1775_v15, %v301_v46 }
 0x1f1   :  { %2592 = vmatprep.subr.bf16.mxu1 %v3864_v62  ;;  %v1788_v62 = vrot.slane %v1775_v15, %v297_v47 }
 0x1f4   :  { %2593 = vmatpush2.bf16.msra.mxu1 %v3862_v63 }
 0x1f5   :  { %2594 = vmatprep.subr.bf16.mxu1 %v3867_v0 }
 0x1f8   :  { %2595 = vmatpush2.bf16.msra.mxu1 %v3865_v1 }
 0x1f9   :  { %2596 = vmatprep.subr.bf16.mxu1 %v3870_v2 }
 0x1fc   :  { %2597 = vmatpush2.bf16.msra.mxu1 %v3868_v3 }
 0x1fd   :  { %3355 = vmatprep.subr.bf16.mxu1 %v3887_v16 }
 0x1ff   :  { %2599 = vmatmul.mubr.bf16.vlgmr.msra.gmra.mxu1 %v4125_v31  ;;  %v3899_v31 = vld [vmem:[#allocation6 + $0xc8] sm:$0xff]  }
 0x200   :  { %3356 = vmatpush3.bf16.msra.mxu1 %v3888_v17 }
 0x201   :  { %3357 = vmatprep.subr.bf16.mxu1 %v3889_v18 }
 0x204   :  { %3358 = vmatpush3.bf16.msra.mxu1 %v3890_v19 }
 0x205   :  { %3359 = vmatprep.subr.bf16.mxu1 %v3891_v20 }
 0x208   :  { %3360 = vmatpush3.bf16.msra.mxu1 %v3892_v22  ;;  %v3300_v22 = vld [vmem:[%s4155_s6] ss:$0 sm:$0xff] }
 0x209   :  { %3361 = vmatprep.subr.bf16.mxu1 %v3893_v24 }
 0x20c   :  { %3362 = vmatpush3.bf16.msra.mxu1 %v3894_v25 }
 0x20d   :  { %3363 = vmatprep.subr.bf16.mxu1 %v3895_v27 }
 0x210   :  { %3364 = vmatpush3.bf16.msra.mxu1 %v3896_v28 }
 0x211   :  { %3365 = vmatprep.subr.bf16.mxu1 %v3897_v29 }
 0x214   :  { %3366 = vmatpush3.bf16.msra.mxu1 %v3898_v30 }
 0x215   :  { %3367 = vmatprep.subr.bf16.mxu1 %v3899_v31 }
 0x218   :  { %3368 = vmatpush3.bf16.msra.mxu1 %v3900_v32 }
 0x219   :  { %3369 = vmatprep.subr.bf16.mxu1 %v3901_v33 }
 0x21c   :  { %3370 = vmatpush3.bf16.msra.mxu1 %v3902_v34 }
 0x236   :  { %v2471_v35 = vpop.f32.mrf.mxu0 }
 0x237   :  { %v2472_v54 = vadd.f32 %v2471_v35, %v1780_v39 }
 0x238   :  { %v2473_v36 = vpop.f32.mrf.mxu0 }
 0x239   :  { %v2474_v26 = vadd.f32 %v2473_v36, %v1784_v38 }
 0x23a   :  { %v2475_v37 = vpop.f32.mrf.mxu0 }
 0x23b   :  { %v2476_v23 = vadd.f32 %v2475_v37, %v1780_v39 }
 0x23c   :  { %v2477_v41 = vpop.f32.mrf.mxu0 }
 0x23d   :  { %v2478_v48 = vadd.f32 %v2477_v41, %v1784_v38 }
 0x276   :  { %v2557_v42 = vpop.f32.mrf.mxu0 }
 0x277   :  { %v2558_v4 = vadd.f32 %v2557_v42, %v1788_v62 }
 0x278   :  { %v2559_v59 = vpop.f32.mrf.mxu0 }
 0x279   :  { %v2560_v2 = vadd.f32 %v2559_v59, %v1792_v61 }
 0x27a   :  { %v2561_v60 = vpop.f32.mrf.mxu0 }
 0x27b   :  { %v2562_v3 = vadd.f32 %v2561_v60, %v1788_v62 }
 0x27c   :  { %v2563_v0 = vpop.f32.mrf.mxu0 }
 0x27d   :  { %v2564_v5 = vadd.f32 %v2563_v0, %v1792_v61 }
 0x27f   :  { %v2514_v13 = vpop.f32.mrf.mxu1 }
 0x280   :  { %v2515_v51 = vadd.f32 %v2514_v13, %v2472_v54 }
 0x281   :  { %v2516_v43 = vpop.f32.mrf.mxu1 }
 0x282   :  { %v2517_v49 = vadd.f32 %v2516_v43, %v2474_v26  ;;  %v2609_v21 = vmax.f32 %v2515_v51, 0.0 }
 0x283   :  { %v2518_v12 = vpop.f32.mrf.mxu1 }
 0x284   :  { %v2519_v50 = vadd.f32 %v2518_v12, %v2476_v23  ;;  %v2610_v55 = vmax.f32 %v2517_v49, 0.0 }
 0x285   :  { %v2520_v44 = vpop.f32.mrf.mxu1 }
 0x286   :  { %v2521_v52 = vadd.f32 %v2520_v44, %v2478_v48  ;;  %v2613_v53 = vmax.f32 %v2519_v50, 0.0 }
 0x288   :  { %v2614_v56 = vmax.f32 %v2521_v52, 0.0  ;;  %v2617_v58 = vpack.c.bf16 %v2613_v53, %v2609_v21 }
 0x28a   :  { %v2618_v57 = vpack.c.bf16 %v2614_v56, %v2610_v55 }
 0x28c   :  { %2916 = vmatprep.mubr.bf16.mxu0 %v2618_v57 }
 0x28d   :  { %2917 = vmatmul.mubr.bf16.vlgmr.msra.gmra.mxu0 %v2617_v58 }
 0x2bf   :  { %v2600_v63 = vpop.f32.mrf.mxu1 }
 0x2c0   :  { %v2601_v8 = vadd.f32 %v2600_v63, %v2558_v4 }
 0x2c1   :  { %v2602_v1 = vpop.f32.mrf.mxu1 }
 0x2c2   :  { %v2603_v6 = vadd.f32 %v2602_v1, %v2560_v2  ;;  %v2611_v46 = vmax.f32 %v2601_v8, 0.0 }
 0x2c3   :  { %v2604_v45 = vpop.f32.mrf.mxu1 }
 0x2c4   :  { %v2605_v7 = vadd.f32 %v2604_v45, %v2562_v3  ;;  %v2612_v14 = vmax.f32 %v2603_v6, 0.0 }
 0x2c5   :  { %v2606_v9 = vpop.f32.mrf.mxu1 }
 0x2c6   :  { %v2607_v10 = vadd.f32 %v2606_v9, %v2564_v5  ;;  %v2615_v11 = vmax.f32 %v2605_v7, 0.0 }
 0x2c8   :  { %v2616_v16 = vmax.f32 %v2607_v10, 0.0  ;;  %v2619_v40 = vpack.c.bf16 %v2615_v11, %v2611_v46 }
 0x2ca   :  { %v2620_v17 = vpack.c.bf16 %v2616_v16, %v2612_v14 }
 0x2cc   :  { %2957 = vmatprep.mubr.bf16.mxu1 %v2620_v17 }
 0x2cd   :  { %2958 = vmatmul.mubr.bf16.vlgmr.msra.gmra.mxu1 %v2619_v40 }
 0x34d   :  { %v3349_v47 = vpop.f32.mrf.mxu0 }
 0x34f   :  { %v3350_v18 = vpop.f32.mrf.mxu0 }
 0x350   :  { %v3351_v20 = vadd.f32 %v3350_v18, %v3349_v47 }
 0x351   :  { %v3352_v19 = vpop.f32.mrf.mxu0 }
 0x352   :  { %v2919_v28 = vadd.f32 %v3351_v20, %v3300_v22 }
 0x353   :  { %v3353_v24 = vpop.f32.mrf.mxu0 }
 0x354   :  { %v3354_v29 = vadd.f32 %v3353_v24, %v3352_v19 }
 0x356   :  { %v2922_v34 = vadd.f32 %v3354_v29, %v3300_v22 }
 0x38d   :  { %v3371_v25 = vpop.f32.mrf.mxu1 }
 0x38f   :  { %v3372_v27 = vpop.f32.mrf.mxu1 }
 0x390   :  { %v3373_v30 = vadd.f32 %v3372_v27, %v3371_v25 }
 0x391   :  { %v3374_v31 = vpop.f32.mrf.mxu1 }
 0x392   :  { %v2960_v32 = vadd.f32 %v3373_v30, %v2919_v28 }
 0x393   :  { %v3375_v33 = vpop.f32.mrf.mxu1 }
 0x394   :  { %2966 = vst [vmem:[%s4156_s7] sm:$0xff] %v2960_v32  ;;  %v3376_v35 = vadd.f32 %v3375_v33, %v3374_v31 }
 0x396   :  { %v2963_v36 = vadd.f32 %v3376_v35, %v2922_v34 }
 0x398   :  { %2967 = vst [vmem:[%s4156_s7 + $0x8] sm:$0xff] %v2963_v36 }
 0x399   :  { %2972 = vsyncpa [#allocation3], 1 }
 0x39a   :  { %2973 = vsyncpa [#allocation5], 1 }

</bundles_post_ra>
